<compile_context>
chip_gen: v7x
topology: tpu7x:2x2x1
jax: 0.10.0
libtpu: 0.0.40
codegen_flags: <defaults>
</compile_context>

<pallas_src>
import math

import jax
import jax.numpy as jnp
from jax.experimental import pallas as pl
from jax.experimental.pallas import tpu as pltpu


_NEG_LARGE = -1e30  # bias for padded vocab columns: exp() underflows to 0


def _round_up(n, m):
    return ((n + m - 1) // m) * m


def _sublane_multiple(dtype):
    """Minimum second-to-last block dim for this dtype (sublane packing)."""
    bits = jnp.dtype(dtype).itemsize * 8
    if bits >= 32:
        return 8
    if bits == 16:
        return 16
    return 32


def _default_plan():
    """Generation-aware tile / VMEM defaults (conservative fallback = v7x)."""
    try:
        vmem_cap = getattr(pltpu.get_tpu_info(), "vmem_capacity_bytes", 0)
    except Exception:  # no TPU info available at trace time
        vmem_cap = 0
    if vmem_cap >= 100 * 1024 * 1024:          # v5e / v6e: 128 MiB physical
        return dict(tm=512, tn=1024, vmem_limit_bytes=96 * 1024 * 1024)
    return dict(tm=256, tn=512, vmem_limit_bytes=48 * 1024 * 1024)  # v7x-safe


def _logits_lse_kernel(x_ref, w_ref, b_ref, logits_ref, lse_ref, m_sc, l_sc):
    """One (row-tile, vocab-tile) grid step.

    x_ref:      (tm, D)   input rows          (compute dtype)
    w_ref:      (D, tn)   weight tile         (compute dtype)
    b_ref:      (1, tn)   bias tile           (f32)
    logits_ref: (tm, tn)  raw logits output tile
    lse_ref:    (tm, 1)   per-row log-sum-exp (accumulator across vocab axis)
    m_sc, l_sc: (tm, 1)   running max / running sum-of-exp (f32 scratch)
    """
    k = pl.program_id(1)  # vocab tile index (innermost)

    # MXU matmul: operands stay in their compute dtype, f32 accumulation.
    logits = jnp.dot(x_ref[...], w_ref[...], preferred_element_type=jnp.float32)
    logits = logits + b_ref[...]

    @pl.when(k == 0)
    def _init():
        m_sc[...] = jnp.full_like(m_sc, -jnp.inf)
        l_sc[...] = jnp.zeros_like(l_sc)

    # Online softmax statistics.
    m_prev = m_sc[...]
    m_new = jnp.maximum(m_prev, jnp.max(logits, axis=-1, keepdims=True))
    l_new = (l_sc[...] * jnp.exp(m_prev - m_new)
             + jnp.sum(jnp.exp(logits - m_new), axis=-1, keepdims=True))
    m_sc[...] = m_new
    l_sc[...] = l_new

    # Raw logits go straight to HBM (real data, no throwaway writes).
    logits_ref[...] = logits.astype(logits_ref.dtype)
    # Running LSE; the block is resident across the vocab axis, so the value
    # written on the last vocab tile is the one that lands in HBM.
    lse_ref[...] = m_new + jnp.log(l_new)


def _subtract_lse_kernel(logits_ref, lse_ref, o_ref):
    """Elementwise finalize: out = logits - lse (mem-bound, lane-dense tiles)."""
    o_ref[...] = (logits_ref[...].astype(jnp.float32) - lse_ref[...]).astype(o_ref.dtype)


def generator_forward(x, weight_t, bias, *, tm=None, tn=None, out_dtype=None,
                      compute_dtype=None, vmem_limit_bytes=None):
    """log_softmax(x @ weight_t + bias, axis=-1).

    x:        (B, S, d_model)
    weight_t: (d_model, vocab)  -- transpose of PyTorch nn.Linear weight.
    bias:     (vocab,)
    compute_dtype: dtype fed to the MXU (e.g. jnp.bfloat16); default = x.dtype.
    """
    B, S, D = x.shape
    Dw, V = weight_t.shape
    assert Dw == D, "weight_t must have shape (d_model, vocab)"

    plan = _default_plan()
    if tm is None:
        tm = plan["tm"]
    if tn is None:
        tn = plan["tn"]
    if vmem_limit_bytes is None:
        vmem_limit_bytes = plan["vmem_limit_bytes"]
    if out_dtype is None:
        out_dtype = x.dtype
    if compute_dtype is None:
        compute_dtype = x.dtype

    x = x.astype(compute_dtype)
    weight_t = weight_t.astype(compute_dtype)
    bias_f32 = bias.astype(jnp.float32)

    M = B * S
    # Dtype-aware tile clamps: rows align to the sublane-packing requirement
    # of the narrowest dtype in play; vocab tiles align to 128 lanes.
    row_align = max(_sublane_multiple(compute_dtype), _sublane_multiple(out_dtype))
    tm = max(row_align, min(_round_up(tm, row_align), _round_up(M, row_align)))
    tn = max(128, min(_round_up(tn, 128), _round_up(V, 128)))

    Mp = _round_up(M, tm)
    Vp = _round_up(V, tn)

    x2d = x.reshape(M, D)
    if Mp != M:
        x2d = jnp.pad(x2d, ((0, Mp - M), (0, 0)))

    w = weight_t
    b2d = bias_f32.reshape(1, V)
    if Vp != V:
        w = jnp.pad(w, ((0, 0), (0, Vp - V)))
        # Padded vocab columns: very negative bias -> exp() underflows to 0,
        # so they never affect the softmax normalizer.
        b2d = jnp.pad(b2d, ((0, 0), (0, Vp - V)), constant_values=_NEG_LARGE)

    grid = (Mp // tm, Vp // tn)

    # ---- kernel 1: matmul + raw logits + per-row LSE (single vocab sweep) ----
    logits, lse = pl.pallas_call(
        _logits_lse_kernel,
        out_shape=(jax.ShapeDtypeStruct((Mp, Vp), out_dtype),
                   jax.ShapeDtypeStruct((Mp, 1), jnp.float32)),
        grid_spec=pltpu.PrefetchScalarGridSpec(
            num_scalar_prefetch=0,
            grid=grid,
            in_specs=[
                pl.BlockSpec((tm, D), lambda i, k: (i, 0)),   # rows of x
                pl.BlockSpec((D, tn), lambda i, k: (0, k)),   # weight tile
                pl.BlockSpec((1, tn), lambda i, k: (0, k)),   # bias tile
            ],
            out_specs=[
                pl.BlockSpec((tm, tn), lambda i, k: (i, k)),  # raw logits
                pl.BlockSpec((tm, 1), lambda i, k: (i, 0)),   # LSE accumulator
            ],
            scratch_shapes=[
                pltpu.VMEM((tm, 1), jnp.float32),  # running max
                pltpu.VMEM((tm, 1), jnp.float32),  # running sum-of-exp
            ],
        ),
        compiler_params=pltpu.CompilerParams(
            # Row tiles are embarrassingly parallel (megacore can split them);
            # the vocab sweep carries online-softmax state -> arbitrary.
            dimension_semantics=("parallel", "arbitrary"),
            vmem_limit_bytes=vmem_limit_bytes,
        ),
    )(x2d, w, b2d)

    # ---- kernel 2: mem-bound finalize, out = logits - lse ----
    out = pl.pallas_call(
        _subtract_lse_kernel,
        out_shape=jax.ShapeDtypeStruct((Mp, Vp), out_dtype),
        grid_spec=pltpu.PrefetchScalarGridSpec(
            num_scalar_prefetch=0,
            grid=grid,
            in_specs=[
                pl.BlockSpec((tm, tn), lambda i, k: (i, k)),
                pl.BlockSpec((tm, 1), lambda i, k: (i, 0)),
            ],
            out_specs=pl.BlockSpec((tm, tn), lambda i, k: (i, k)),
        ),
        compiler_params=pltpu.CompilerParams(
            dimension_semantics=("parallel", "parallel"),
            vmem_limit_bytes=vmem_limit_bytes,
        ),
    )(logits, lse)

    return out[:M, :V].reshape(B, S, V)


def init_generator_params(key, d_model, vocab, dtype=jnp.float32):
    """nn.Linear-style init.  The weight is stored as (d_model, vocab) — the
    transpose of PyTorch's layout — so the forward pass never transposes it."""
    k_w, k_b = jax.random.split(key)
    bound = 1.0 / math.sqrt(d_model)
    weight_t = jax.random.uniform(k_w, (d_model, vocab), dtype=dtype,
                                  minval=-bound, maxval=bound)
    bias = jax.random.uniform(k_b, (vocab,), dtype=dtype,
                              minval=-bound, maxval=bound)
    return weight_t, bias


if __name__ == "__main__":
    key = jax.random.PRNGKey(0)
    k_x, k_p = jax.random.split(key)

    # Small demo shapes chosen so the row tiling, the vocab tiling, and both
    # padding paths (M and V) are exercised.
    B, S, D, V = 4, 60, 128, 384     # M = 240 rows -> pads to 256; V pads to 512
    x = jax.random.normal(k_x, (B, S, D), dtype=jnp.float32)
    weight_t, bias = init_generator_params(k_p, D, V)

    ref = jax.nn.log_softmax(x @ weight_t + bias, axis=-1)

    # f32 path (bit-for-bit-ish vs reference), small tiles to exercise padding.
    out = generator_forward(x, weight_t, bias, tm=128, tn=256)
    out = jax.block_until_ready(out)
    assert out.shape == (B, S, V)
    assert jnp.allclose(out, ref, atol=1e-4, rtol=1e-4), (
        float(jnp.max(jnp.abs(out - ref))))

    # bf16-operand path (MXU-rate matmul, halved weight traffic), default
    # generation-aware tiles; looser tolerance for bf16 rounding.
    out_bf = generator_forward(x, weight_t, bias, compute_dtype=jnp.bfloat16)
    out_bf = jax.block_until_ready(out_bf)
    assert out_bf.shape == (B, S, V)
    assert jnp.allclose(out_bf, ref, atol=5e-2, rtol=5e-2), (
        float(jnp.max(jnp.abs(out_bf - ref))))

    print("KERNEL_OK")
</pallas_src>

<mosaic_0001>
module attributes {stable_mosaic.version = 11 : i64} {
  func.func @_logits_lse_kernel(%arg0: i32, %arg1: i32, %arg2: memref<128x128xf32, #tpu.memory_space<vmem>>, %arg3: memref<128x256xf32, #tpu.memory_space<vmem>>, %arg4: memref<1x256xf32, #tpu.memory_space<vmem>>, %arg5: memref<128x256xf32, #tpu.memory_space<vmem>>, %arg6: memref<128x1xf32, #tpu.memory_space<vmem>>, %arg7: memref<128x1xf32, #tpu.memory_space<vmem>>, %arg8: memref<128x1xf32, #tpu.memory_space<vmem>>) attributes {dimension_semantics = [#tpu.dimension_semantics<parallel>, #tpu.dimension_semantics<arbitrary>], iteration_bounds = array<i64: 2, 2>, scalar_prefetch = 0 : i64, scratch_operands = 2 : i64, tpu.core_type = #tpu.core_type<tc>, window_params = [{transform_indices = @transform_0, window_bounds = array<i64: 128, 128>}, {transform_indices = @transform_1, window_bounds = array<i64: 128, 256>}, {transform_indices = @transform_2, window_bounds = array<i64: 1, 256>}, {transform_indices = @transform_3, window_bounds = array<i64: 128, 256>}, {transform_indices = @transform_4, window_bounds = array<i64: 128, 1>}]} {
    %c0 = arith.constant 0 : index
    %c0_0 = arith.constant 0 : index
    %0 = vector.load %arg2[%c0, %c0_0] : memref<128x128xf32, #tpu.memory_space<vmem>>, vector<128x128xf32>
    %c0_1 = arith.constant 0 : index
    %c0_2 = arith.constant 0 : index
    %1 = vector.load %arg3[%c0_1, %c0_2] : memref<128x256xf32, #tpu.memory_space<vmem>>, vector<128x256xf32>
    %cst = arith.constant dense<0.000000e+00> : vector<128x256xf32>
    %2 = tpu.matmul %0, %1, %cst {dimension_numbers = #tpu.dot_dimension_numbers<[1], [0], [0], [1], [0, 0, 1, 1], [], []>} : vector<128x128xf32>, vector<128x256xf32>, vector<128x256xf32> -> vector<128x256xf32>
    %c0_3 = arith.constant 0 : index
    %c0_4 = arith.constant 0 : index
    %3 = vector.load %arg4[%c0_3, %c0_4] : memref<1x256xf32, #tpu.memory_space<vmem>>, vector<1x256xf32>
    %4 = vector.broadcast %3 : vector<1x256xf32> to vector<128x256xf32>
    %5 = arith.addf %2, %4 : vector<128x256xf32>
    %c0_i32 = arith.constant 0 : i32
    %6 = arith.cmpi eq, %arg1, %c0_i32 : i32
    %7 = arith.extui %6 : i1 to i32
    %c0_i32_5 = arith.constant 0 : i32
    %8 = arith.cmpi ne, %7, %c0_i32_5 : i32
    scf.if %8 {
      %cst_20 = arith.constant 0xFF800000 : f32
      %29 = vector.broadcast %cst_20 : f32 to vector<128x1xf32>
      %c0_21 = arith.constant 0 : index
      %c0_22 = arith.constant 0 : index
      %30 = vector.load %arg7[%c0_21, %c0_22] : memref<128x1xf32, #tpu.memory_space<vmem>>, vector<128x1xf32>
      tpu.vector_store %arg7[%c0_21, %c0_22], %29 {strides = array<i32>} : memref<128x1xf32, #tpu.memory_space<vmem>>, vector<128x1xf32>,
      %cst_23 = arith.constant 0.000000e+00 : f32
      %31 = vector.broadcast %cst_23 : f32 to vector<128x1xf32>
      %c0_24 = arith.constant 0 : index
      %c0_25 = arith.constant 0 : index
      %32 = vector.load %arg8[%c0_24, %c0_25] : memref<128x1xf32, #tpu.memory_space<vmem>>, vector<128x1xf32>
      tpu.vector_store %arg8[%c0_24, %c0_25], %31 {strides = array<i32>} : memref<128x1xf32, #tpu.memory_space<vmem>>, vector<128x1xf32>,
    } else {
    }
    %c0_6 = arith.constant 0 : index
    %c0_7 = arith.constant 0 : index
    %9 = vector.load %arg7[%c0_6, %c0_7] : memref<128x1xf32, #tpu.memory_space<vmem>>, vector<128x1xf32>
    %cst_8 = arith.constant dense<0xFF800000> : vector<128xf32>
    %10 = vector.multi_reduction <maximumf>, %5, %cst_8 [1] : vector<128x256xf32> to vector<128xf32>
    %11 = vector.shape_cast %10 : vector<128xf32> to vector<128x1xf32>
    %12 = arith.maximumf %9, %11 : vector<128x1xf32>
    %c0_9 = arith.constant 0 : index
    %c0_10 = arith.constant 0 : index
    %13 = vector.load %arg8[%c0_9, %c0_10] : memref<128x1xf32, #tpu.memory_space<vmem>>, vector<128x1xf32>
    %14 = arith.subf %9, %12 : vector<128x1xf32>
    %15 = math.exp %14 : vector<128x1xf32>
    %16 = arith.mulf %13, %15 : vector<128x1xf32>
    %17 = vector.broadcast %12 : vector<128x1xf32> to vector<128x256xf32>
    %18 = arith.subf %5, %17 : vector<128x256xf32>
    %19 = math.exp %18 : vector<128x256xf32>
    %cst_11 = arith.constant dense<0.000000e+00> : vector<128xf32>
    %20 = vector.multi_reduction <add>, %19, %cst_11 [1] : vector<128x256xf32> to vector<128xf32>
    %21 = vector.shape_cast %20 : vector<128xf32> to vector<128x1xf32>
    %22 = arith.addf %16, %21 : vector<128x1xf32>
    %c0_12 = arith.constant 0 : index
    %c0_13 = arith.constant 0 : index
    %23 = vector.load %arg7[%c0_12, %c0_13] : memref<128x1xf32, #tpu.memory_space<vmem>>, vector<128x1xf32>
    tpu.vector_store %arg7[%c0_12, %c0_13], %12 {strides = array<i32>} : memref<128x1xf32, #tpu.memory_space<vmem>>, vector<128x1xf32>,
    %c0_14 = arith.constant 0 : index
    %c0_15 = arith.constant 0 : index
    %24 = vector.load %arg8[%c0_14, %c0_15] : memref<128x1xf32, #tpu.memory_space<vmem>>, vector<128x1xf32>
    tpu.vector_store %arg8[%c0_14, %c0_15], %22 {strides = array<i32>} : memref<128x1xf32, #tpu.memory_space<vmem>>, vector<128x1xf32>,
    %c0_16 = arith.constant 0 : index
    %c0_17 = arith.constant 0 : index
    %25 = vector.load %arg5[%c0_16, %c0_17] : memref<128x256xf32, #tpu.memory_space<vmem>>, vector<128x256xf32>
    tpu.vector_store %arg5[%c0_16, %c0_17], %5 {strides = array<i32>} : memref<128x256xf32, #tpu.memory_space<vmem>>, vector<128x256xf32>,
    %26 = math.log %22 : vector<128x1xf32>
    %27 = arith.addf %12, %26 : vector<128x1xf32>
    %c0_18 = arith.constant 0 : index
    %c0_19 = arith.constant 0 : index
    %28 = vector.load %arg6[%c0_18, %c0_19] : memref<128x1xf32, #tpu.memory_space<vmem>>, vector<128x1xf32>
    tpu.vector_store %arg6[%c0_18, %c0_19], %27 {strides = array<i32>} : memref<128x1xf32, #tpu.memory_space<vmem>>, vector<128x1xf32>,
    return
  }
  func.func @transform_0(%arg0: i32, %arg1: i32) -> (i32, i32) {
    %c0_i32 = arith.constant 0 : i32
    %c0_i32_0 = arith.constant 0 : i32
    return %arg0, %c0_i32 : i32, i32
  }
  func.func @transform_1(%arg0: i32, %arg1: i32) -> (i32, i32) {
    %c0_i32 = arith.constant 0 : i32
    %c0_i32_0 = arith.constant 0 : i32
    return %c0_i32, %arg1 : i32, i32
  }
  func.func @transform_2(%arg0: i32, %arg1: i32) -> (i32, i32) {
    %c0_i32 = arith.constant 0 : i32
    %c0_i32_0 = arith.constant 0 : i32
    return %c0_i32, %arg1 : i32, i32
  }
  func.func @transform_3(%arg0: i32, %arg1: i32) -> (i32, i32) {
    %c0_i32 = arith.constant 0 : i32
    return %arg0, %arg1 : i32, i32
  }
  func.func @transform_4(%arg0: i32, %arg1: i32) -> (i32, i32) {
    %c0_i32 = arith.constant 0 : i32
    %c0_i32_0 = arith.constant 0 : i32
    return %arg0, %c0_i32 : i32, i32
  }
}

</mosaic_0001>

<bundles_post_ra>
// kernel: tpu_custom_call.1
= control target key start
LH: loop header
LB: loop body
LE: loop exit
PB: predicated region body
PF: predicated region fallthrough
CT: control target
= control target key end

     0   :  { %s2764_s0 = inlined_call_operand.hbm [shape: f32[256,128], index: 0, kind: input, shape index: {}]   ;;  %s2765_s1 = inlined_call_operand.hbm [shape: f32[128,512], index: 1, kind: input, shape index: {}]   ;;  %s2766_s2 = inlined_call_operand.vmem [shape: f32[1,512], index: 2, kind: input, shape index: {}]   ;;  %s2767_s3 = inlined_call_operand.hbm [shape: f32[256,512], index: 3, kind: output, shape index: {0}]   ;;  %s2768_s4 = inlined_call_operand.vmem [shape: f32[256,1], index: 4, kind: output, shape index: {1}]  }
   0x1   :  { %2800 = sst [smem:[#allocation32_spill]] %s2764_s0 }
   0x2   :  { %2801 = sst [smem:[#allocation33_spill]] %s2766_s2 }
   0x3   :  { %2802 = sst [smem:[#allocation34_spill]] %s2767_s3 }
   0x4   :  { %2803 = sst [smem:[#allocation35_spill]] %s2768_s4 }
   0x5   :  { %10 = vsyncpa [#allocation5], 0 }
   0x6   :  { %12 = vsyncpa [#allocation5 + $0x1], 0 }
   0x7   :  { %13 = vsyncpa [#allocation8], 0 }
   0x8   :  { %15 = vsyncpa [#allocation8 + $0x1], 0 }
   0x9   :  { %16 = vsyncpa [#allocation6], 0 }
   0xa   :  { %18 = vsyncpa [#allocation6 + $0x1], 0  ;;  %s1865_s15 = smov 0   ;;  %s1867_s16 = smov 0  }
   0xb   :  { %s1869_s17 = smov 0   ;;  %s1871_s18 = smov 0  }
   0xc   :  { %s1873_s19 = smov 0   ;;  %s1875_s20 = smov 0  }
   0xd   :  { %s1877_s21 = smov 0   ;;  %s1879_s22 = smov 0  }
   0xe   :  { %s1881_s23 = smov 0   ;;  %s1883_s24 = smov 0  }
   0xf   :  { %s1885_s25 = smov 0   ;;  %s1887_s26 = smov 0  }
  0x10   :  { %s1889_s27 = smov 0   ;;  %s1891_s28 = smov 0  }
  0x11 LB: > { %2804 = sst [smem:[#allocation13_spill]] %s1807_s24  ;;  %s1264_s29 = sadd.s32 4294967295, %s1823_s28   ;;  %s1823_s28 = sphi %s1891_s28, %s24_s28   ;;  %s1819_s27 = sphi %s1889_s27, %s2866_s27   ;;  %s1815_s26 = sphi %s1887_s26, %s2877_s26   ;;  %s1811_s25 = sphi %s1885_s25, %s2864_s25   ;;  %s1807_s24 = sphi %s1883_s24, %s2876_s24   ;;  %s1803_s23 = sphi %s1881_s23, %s2875_s23   ;;  %s1799_s22 = sphi %s1879_s22, %s2874_s22   ;;  %s1795_s21 = sphi %s1877_s21, %s2873_s21   ;;  %s1791_s20 = sphi %s1875_s20, %s2872_s20   ;;  %s1787_s19 = sphi %s1873_s19, %s2871_s19   ;;  %s1783_s18 = sphi %s1871_s18, %s2870_s18   ;;  %s1779_s17 = sphi %s1869_s17, %s2869_s17   ;;  %s1775_s16 = sphi %s1867_s16, %s2868_s16   ;;  %s1771_s15 = sphi %s1865_s15, %s2867_s15  }
  0x12   : > { %2805 = sst [smem:[#allocation14_spill]] %s1819_s27  ;;  %p50_p0 = scmp.ne.s32.totalorder %s1803_s23, %s1799_s22 }
  0x13   : > { %p2771_p1 = scmp.eq.s32.totalorder %s1823_s28, 0  ;;  %p56_p2 = scmp.ne.s32.totalorder %s1799_s22, %s1795_s21 }
  0x14   : > { %p1940_p3 = scmp.eq.s32.totalorder %s1264_s29, 0  ;;  %p1944_p4 = scmp.eq.s32.totalorder %s1264_s29, 3 }
  0x15   : > { %p52_p5 = por %p2771_p1, %p50_p0  ;;  %p2770_p7 = scmp.lt.s32.totalorder %s1823_s28, 4 }
  0x16   : > { %s2807_s7 = scalar_select %p1944_p4, 1, 0 }
  0x17   : > { %p1952_p6 = por %p1940_p3, %p56_p2  ;;  %s186_s9 = sand.u32 1, %s1803_s23  }
  0x18   : > { %s1289_s10 = sshll.u32 %s1819_s27, 11  ;;  %s1268_s11 = sshll.u32 %s186_s9, 7 }
  0x19   : > { %s2808_s8 = scalar_select %p1952_p6, 1, 0 }
  0x1a   : > { %s2809_s0 = sld [smem:[#allocation32_spill]]  ;;  %s190_s21 = scalar_lea.vmem [#allocation4], %s1268_s11 }
  0x1b   : > { %s197_s29 = sshll.u32 %s190_s21, 4  ;;  %p1966_p8 = pnand %p2770_p7, %p52_p5  ;;  %s1970_s29 = int_to_ptr.vmem [resolvable:$true] %s197_s29 }
  0x1c   : > { %s1972_s30 = scalar_lea.sflag [#allocation5], %s186_s9 }
  0x1d   : > { %p1615_p10 = pneg %p1966_p8 }
  0x20   : > { %s1962_s14 = scalar_lea.hbm %s2809_s0, %s1289_s10  ;;  %s1618_s13 = scalar_lea.hbm %s2809_s0, 4096 }
  0x21   : > { %s1613_s12 = scalar_lea.hbm %s1962_s14, 2048  ;;  %p1619_p13 = scmp.lt.u32.totalorder %s1962_s14, %s2809_s0 }
  0x22   : > { %p1614_p9 = scmp.ne.s32.totalorder %s1962_s14, %s1613_s12  ;;  %p1620_p0 = scmp.lt.u32.totalorder %s1618_s13, %s1613_s12 }
  0x23   : > { %p1622_p5 = scmp.lt.u32.totalorder %s1613_s12, %s1962_s14 }
  0x24   : > { %p1616_p11 = pnand %p1615_p10, %p1614_p9  ;;  %p1621_p2 = por %p1620_p0, %p1619_p13 }
  0x26   : > { %p1617_p12 = pneg %p1616_p11  ;;  %p1623_p7 = por %p1622_p5, %p1621_p2 }
  0x28   : > { %p1624_p1 = pnand %p1623_p7, %p1617_p12 }
  0x2a   : > { %1627 = shalt.err (!%p1624_p1)
}
  0x2b   : > { %s1628_s9 = scalar_lea.vmem %s1970_s29, 2048  ;;  %s1825_s10 = smov [#allocation4]  }
  0x2c   : > { %p1629_p9 = scmp.ne.s32.totalorder %s1970_s29, %s1628_s9  ;;  %s1633_s11 = sshll.u32 %s1825_s10, 4  ;;  %s1634_s11 = int_to_ptr.vmem [resolvable:$false] %s1633_s11 }
  0x2d   : > { %s1635_s3 = scalar_lea.vmem %s1634_s11, 4096  ;;  %p1636_p4 = scmp.lt.s32.totalorder %s1970_s29, %s1634_s11 }
  0x2e   : > { %p1631_p11 = pnand %p1629_p9, %p1615_p10  ;;  %p1637_p13 = scmp.lt.s32.totalorder %s1635_s3, %s1628_s9 }
  0x30   : > { %p1632_p6 = pneg %p1631_p11  ;;  %p1638_p0 = por %p1637_p13, %p1636_p4 }
  0x32   : > { %p1639_p2 = pnand %p1638_p0, %p1632_p6 }
  0x34   : > { %1642 = shalt.err (!%p1639_p2)
}
  0x35   : > { %s1826_s12 = smov 128   ;;  %s1827_s13 = smov 8  }
  0x36   : > { %1349 = dma.hbm_to_vmem [thread:$0]  (!%p1966_p8), %s1962_s14, 2048, %s1970_s29, %s1972_s30, %s1826_s12, %s1826_s12, %s1827_s13  }
  0x37   : > { %p1274_p1 = scmp.ge.s32.totalorder %s1823_s28, 1  ;;  %p234_p4 = scmp.lt.s32.totalorder %s1823_s28, 5 }
  0x38   : > { %s1265_s9 = sadd.s32 4294967294, %s1823_s28   ;;  %s33_s10 = sadd.s32 1, %s1815_s26 }
  0x39   : > { %p2002_p6 = pnand %p1274_p1, %p234_p4  ;;  %s69_s11 = sadd.s32 1, %s1791_s20 }
  0x3a   : > { %p34_p7 = scmp.ge.s32.totalorder %s33_s10, 2  ;;  %p76_p10 = scmp.ne.s32.totalorder %s1791_s20, %s1787_s19 }
  0x3b   : > { %p82_p12 = scmp.ne.s32.totalorder %s1787_s19, %s1783_s18  ;;  %s123_s5 = sadd.s32 1, %s1779_s17 }
  0x3c   : > { %s2879_s10 = smov (%p34_p7, %s33_s10), 0  ;;  %s2813_s30 = sadd.s32 1, %s1819_s27 }
  0x3d   : > { %2812 = sst [smem:[#allocation15_spill]] %s2879_s10  ;;  %s2881_s30 = smov (!%p34_p7, %s2813_s30), %s1819_s27 }
  0x3e   : > { %s66_s14 = ssub.s32 %s1815_s26, %s2879_s10  ;;  %p2814_p8 = scmp.eq.s32.totalorder %s1823_s28, 0 }
  0x3f   : > { %p38_p9 = scmp.ge.s32.totalorder %s2881_s30, 2  ;;  %p67_p11 = scmp.eq.s32.totalorder %s66_s14, 0 }
  0x40   : > { %p2023_p5 = por %p76_p10, %p2814_p8  ;;  %p2029_p13 = por %p82_p12, %p1940_p3 }
  0x41   : > { %p133_p0 = scmp.ne.s32.totalorder %s1779_s17, %s1775_s16  ;;  %s2883_s30 = smov (%p38_p9, %s2881_s30), 0 }
  0x42   : > { %s2816_s18 = scalar_select %p2029_p13, 1, 0 }
  0x43   : > { %2817 = sst [smem:[#allocation16_spill]] %s2883_s30  ;;  %s40_s12 = ssub.s32 %s1819_s27, %s2883_s30 }
  0x44   : > { %s2038_s3 = scalar_select %p67_p11, %s1791_s20, %s69_s11  }
  0x45   : > { %p2819_p2 = scmp.ne.s32.totalorder %s2807_s7, 0  ;;  %p41_p4 = scmp.eq.s32.totalorder %s40_s12, 0 }
  0x46   : > { %2818 = sst [smem:[#allocation17_spill]] %s2038_s3  ;;  %s120_s6 = sor.u32 %s66_s14, %s40_s12 }
  0x47   : > { %p2044_p1 = por %p2819_p2, %p133_p0  ;;  %p121_p3 = scmp.eq.s32.totalorder %s120_s6, 0 }
  0x48   : > { %p139_p7 = scmp.ne.s32.totalorder %s1775_s16, %s1771_s15  ;;  %s2822_s0 = sadd.s32 1, %s1803_s23 }
  0x49   : > { %s2820_s13 = scalar_select %p2044_p1, 1, 0 }
  0x4a   : > { %s2053_s10 = scalar_select %p41_p4, %s1803_s23, %s2822_s0  }
  0x4b   : > { %2821 = sst [smem:[#allocation18_spill]] %s2820_s13  ;;  %p140_p10 = scmp.eq.s32.totalorder %s1265_s9, 3 }
  0x4c   : > { %s2056_s2 = scalar_select %p121_p3, %s1779_s17, %s123_s5  }
  0x4d   : > { %s207_s11 = sand.u32 1, %s1791_s20   ;;  %p2059_p12 = por %p140_p10, %p139_p7 }
  0x4e   : > { %s1271_s3 = sshll.u32 %s207_s11, 8  ;;  %s1290_s30 = sshll.u32 %s1815_s26, 8 }
  0x4f   : > { %s2823_s7 = scalar_select %p2059_p12, 1, 0 }
  0x50   : > { %s211_s27 = scalar_lea.vmem [#allocation7], %s1271_s3  ;;  %s2067_s14 = scalar_lea.hbm %s2765_s1, %s1290_s30 }
  0x51   : > { %s218_s13 = sshll.u32 %s211_s27, 4  ;;  %p2824_p8 = scmp.lt.s32.totalorder %s1823_s28, 4  ;;  %s2069_s13 = int_to_ptr.vmem [resolvable:$true] %s218_s13 }
  0x52   : > { %s2079_s27 = scalar_lea.sflag [#allocation8], %s207_s11  ;;  %s1643_s9 = scalar_lea.hbm %s2067_s14, 4096 }
  0x53   : > { %p2075_p9 = pnand %p2824_p8, %p2023_p5  ;;  %p1644_p11 = scmp.ne.s32.totalorder %s2067_s14, %s1643_s9 }
  0x54   : > { %s1648_s5 = scalar_lea.hbm %s2765_s1, 8192  ;;  %p1649_p5 = scmp.lt.u32.totalorder %s2067_s14, %s2765_s1 }
  0x55   : > { %p1645_p0 = pneg %p2075_p9  ;;  %p1650_p3 = scmp.lt.u32.totalorder %s1648_s5, %s1643_s9 }
  0x56   : > { %p1652_p10 = scmp.lt.u32.totalorder %s1643_s9, %s2067_s14 }
  0x57   : > { %p1646_p2 = pnand %p1645_p0, %p1644_p11  ;;  %p1651_p7 = por %p1650_p3, %p1649_p5 }
  0x59   : > { %p1647_p4 = pneg %p1646_p2  ;;  %p1653_p8 = por %p1652_p10, %p1651_p7 }
  0x5b   : > { %p1654_p12 = pnand %p1653_p8, %p1647_p4 }
  0x5d   : > { %1657 = shalt.err (!%p1654_p12)
}
  0x5e   : > { %s1658_s3 = scalar_lea.vmem %s2069_s13, 4096  ;;  %s1828_s12 = smov [#allocation7]  }
  0x5f   : > { %p1659_p11 = scmp.ne.s32.totalorder %s2069_s13, %s1658_s3  ;;  %s1663_s6 = sshll.u32 %s1828_s12, 4  ;;  %s1664_s6 = int_to_ptr.vmem [resolvable:$false] %s1663_s6 }
  0x60   : > { %s1665_s11 = scalar_lea.vmem %s1664_s6, 8192  ;;  %p1666_p13 = scmp.lt.s32.totalorder %s2069_s13, %s1664_s6 }
  0x61   : > { %p1661_p2 = pnand %p1659_p11, %p1645_p0  ;;  %p1667_p5 = scmp.lt.s32.totalorder %s1665_s11, %s1658_s3 }
  0x63   : > { %p1662_p1 = pneg %p1661_p2  ;;  %p1668_p3 = por %p1667_p5, %p1666_p13 }
  0x65   : > { %p1669_p7 = pnand %p1668_p3, %p1662_p1 }
  0x67   : > { %1672 = shalt.err (!%p1669_p7)
}
  0x68   : > { %s1829_s9 = smov 512   ;;  %s1830_s4 = smov 256  }
  0x69   : > { %s1831_s24 = smov 16   ;;  %238 = sbr.rel (%p2002_p6) target bundleno = 901 (0x385), region = 32 }
  0x6a   : > { %1352 = dma.hbm_to_vmem [thread:$0]  (!%p2075_p9), %s2067_s14, 4096, %s2069_s13, %s2079_s27, %s1829_s9, %s1830_s4, %s1831_s24  }
  0x70   : > { %s240_s5 = sand.u32 1, %s1799_s22   ;;  %p2826_p13 = scmp.ne.s32.totalorder %s2808_s8, 0 }
  0x71   : > { %s1275_s30 = sshll.u32 %s240_s5, 7  ;;  %s241_s29 = scalar_lea.sflag [#allocation5], %s240_s5 }
  0x72   : > { %s2110_s3 = scalar_lea.vmem [#allocation4], %s1275_s30 }
  0x73   : > { %1758 = dma.done.wait (%p2826_p13), %s241_s29, 2048  }
  0x74   : > { %1760 = vsyncadd (%p2826_p13), %s241_s29, 4294965248  ;;  %s249_s12 = sand.u32 1, %s1787_s19   ;;  %p2827_p6 = scmp.ne.s32.totalorder %s2816_s18, 0 }
  0x75   : > { %s1276_s0 = sshll.u32 %s249_s12, 8  ;;  %s250_s13 = scalar_lea.sflag [#allocation8], %s249_s12 }
  0x76   : > { %s2117_s14 = scalar_lea.vmem [#allocation7], %s1276_s0 }
  0x77   : > { %1762 = dma.done.wait (%p2827_p6), %s250_s13, 4096  }
  0x78   : > { %1764 = vsyncadd (%p2827_p6), %s250_s13, 4294963200  ;;  %s282_s8 = sand.u32 1, %s1775_s16   ;;  %s1279_s21 = sshll.u32 %s1811_s25, 4  ;;  %v1832_v0 = vmov 0.0   ;;  %v324_v1 = vld [vmem:[%s2117_s14 + $0x8] sm:$0xff]  ;;  %v326_v2 = vld [vmem:[%s2117_s14 + $0x18] sm:$0xff] }
  0x79   : > { %s2127_s27 = sshll.u32 %s282_s8, 8  ;;  %p302_p1 = scmp.lt.s32.totalorder %s1279_s21, 31  ;;  %431 = vmatprep.mubr.f32.mxu0 %v1832_v0  ;;  %479 = vmatprep.mubr.f32.mxu1 %v1832_v0  ;;  %v323_v3 = vld [vmem:[%s2117_s14] sm:$0xff]  ;;  %v1292_v4 = vpack.c.bf16 %v326_v2, %v324_v1  ;;  %v325_v5 = vld [vmem:[%s2117_s14 + $0x10] sm:$0xff]  ;;  %v328_v6 = vld [vmem:[%s2117_s14 + $0x28] sm:$0xff]  ;;  %v357_v2 = vlaneseq }
  0x7a   : > { %s2828_s9 = sld [smem:[#allocation35_spill]]  ;;  %v330_v7 = vld [vmem:[%s2117_s14 + $0x38] sm:$0xff]  ;;  %v1294_v8 = vpack.c.bf16 %v325_v5, %v323_v3  ;;  %v327_v10 = vld [vmem:[%s2117_s14 + $0x20] sm:$0xff]  ;;  %v329_v11 = vld [vmem:[%s2117_s14 + $0x30] sm:$0xff]  ;;  %s2829_s24 = sld [smem:[#allocation13_spill]] }
  0x7b   : > { %s2885_s21 = smov (!%p302_p1, %s1279_s21), 31  ;;  %v1296_v9 = vpack.c.bf16 %v330_v7, %v328_v6  ;;  %v332_v12 = vld [vmem:[%s2117_s14 + $0x48] sm:$0xff]  ;;  %1293 = vmatprep.subr.bf16.mxu0 %v1292_v4  ;;  %1324 = vmatprep.subr.bf16.mxu1 %v1292_v4  ;;  %v334_v13 = vld [vmem:[%s2117_s14 + $0x58] sm:$0xff]  ;;  %v1298_v14 = vpack.c.bf16 %v329_v11, %v327_v10  ;;  %v331_v16 = vld [vmem:[%s2117_s14 + $0x40] sm:$0xff]  ;;  %v358_v3 = vshrl.u32 %v357_v2, 7  ;;  %s2830_s0 = sld [smem:[#allocation33_spill]] }
  0x7c   : > { %s1280_s18 = sshll.u32 %s2885_s21, 3  ;;  %1295 = vmatpush1.bf16.msra.mxu0 %v1294_v8  ;;  %1332 = vmatpush1.bf16.msra.mxu1 %v1294_v8  ;;  %v1300_v15 = vpack.c.bf16 %v334_v13, %v332_v12  ;;  %v333_v17 = vld [vmem:[%s2117_s14 + $0x50] sm:$0xff]  ;;  %v336_v18 = vld [vmem:[%s2117_s14 + $0x68] sm:$0xff]  ;;  %v338_v19 = vld [vmem:[%s2117_s14 + $0x78] sm:$0xff] }
  0x7d   : > { %1297 = vmatprep.subr.bf16.mxu0 %v1296_v9  ;;  %1325 = vmatprep.subr.bf16.mxu1 %v1296_v9  ;;  %v1302_v20 = vpack.c.bf16 %v333_v17, %v331_v16  ;;  %v1304_v21 = vpack.c.bf16 %v338_v19, %v336_v18  ;;  %v335_v22 = vld [vmem:[%s2117_s14 + $0x60] sm:$0xff]  ;;  %v337_v23 = vld [vmem:[%s2117_s14 + $0x70] sm:$0xff]  ;;  %v340_v24 = vld [vmem:[%s2117_s14 + $0x88] sm:$0xff]  ;;  %v359_v4 = vsub.s32 0, %v358_v3  ;;  %v363_v6 = vsub.s32 1, %v358_v3 }
  0x7e   : > { %v342_v25 = vld [vmem:[%s2117_s14 + $0x98] sm:$0xff]  ;;  %v1306_v26 = vpack.c.bf16 %v337_v23, %v335_v22  ;;  %v339_v28 = vld [vmem:[%s2117_s14 + $0x80] sm:$0xff]  ;;  %v341_v29 = vld [vmem:[%s2117_s14 + $0x90] sm:$0xff] }
  0x7f   : > { %v1308_v27 = vpack.c.bf16 %v342_v25, %v340_v24  ;;  %v344_v30 = vld [vmem:[%s2117_s14 + $0xa8] sm:$0xff]  ;;  %v346_v31 = vld [vmem:[%s2117_s14 + $0xb8] sm:$0xff]  ;;  %v1310_v32 = vpack.c.bf16 %v341_v29, %v339_v28  ;;  %v343_v34 = vld [vmem:[%s2117_s14 + $0xa0] sm:$0xff] }
  0x80   : > { %s2134_s4 = scalar_lea.vmem %s2828_s9, %s1280_s18  ;;  %1299 = vmatpush1.bf16.msra.mxu0 %v1298_v14  ;;  %1333 = vmatpush1.bf16.msra.mxu1 %v1298_v14  ;;  %v1312_v33 = vpack.c.bf16 %v346_v31, %v344_v30  ;;  %v345_v35 = vld [vmem:[%s2117_s14 + $0xb0] sm:$0xff]  ;;  %v348_v36 = vld [vmem:[%s2117_s14 + $0xc8] sm:$0xff]  ;;  %v350_v37 = vld [vmem:[%s2117_s14 + $0xd8] sm:$0xff]  ;;  %s2199_s5 = sshll.u32 %s2829_s24, 1 }
  0x81   : > { %1301 = vmatprep.subr.bf16.mxu0 %v1300_v15  ;;  %1326 = vmatprep.subr.bf16.mxu1 %v1300_v15  ;;  %v1314_v38 = vpack.c.bf16 %v345_v35, %v343_v34  ;;  %v1316_v39 = vpack.c.bf16 %v350_v37, %v348_v36  ;;  %v347_v40 = vld [vmem:[%s2117_s14 + $0xc0] sm:$0xff]  ;;  %v349_v41 = vld [vmem:[%s2117_s14 + $0xd0] sm:$0xff]  ;;  %v352_v42 = vld [vmem:[%s2117_s14 + $0xe8] sm:$0xff]  ;;  %p295_p12 = scmp.lt.s32.totalorder %s2199_s5, 3  ;;  %p1281_p9 = scmp.ne.s32.totalorder %s2829_s24, 0 }
  0x82   : > { %v354_v43 = vld [vmem:[%s2117_s14 + $0xf8] sm:$0xff]  ;;  %v1318_v44 = vpack.c.bf16 %v349_v41, %v347_v40  ;;  %v351_v46 = vld [vmem:[%s2117_s14 + $0xe0] sm:$0xff]  ;;  %v353_v47 = vld [vmem:[%s2117_s14 + $0xf0] sm:$0xff]  ;;  %vm532_vm0 = vcmask (!%p1281_p9), 7168  }
  0x83   : > { %v1320_v45 = vpack.c.bf16 %v354_v43, %v352_v42  ;;  %v1322_v48 = vpack.c.bf16 %v353_v47, %v351_v46  ;;  %v307_v49 = vld [vmem:[%s2110_s3] sm:$0xff]  ;;  %v308_v51 = vld [vmem:[%s2110_s3 + $0x8] sm:$0xff]  ;;  %v309_v53 = vld [vmem:[%s2110_s3 + $0x10] sm:$0xff]  ;;  %s296_s30 = scalar_select %p295_p12, %s2199_s5, 3 }
  0x84   : > { %1303 = vmatpush1.bf16.msra.mxu0 %v1302_v20  ;;  %1334 = vmatpush1.bf16.msra.mxu1 %v1302_v20  ;;  %v315_v50 = vld [vmem:[%s2110_s3 + $0x40] sm:$0xff]  ;;  %v316_v52 = vld [vmem:[%s2110_s3 + $0x48] sm:$0xff]  ;;  %v317_v54 = vld [vmem:[%s2110_s3 + $0x50] sm:$0xff] }
  0x85   : > { %1305 = vmatprep.subr.bf16.mxu0 %v1304_v21  ;;  %1327 = vmatprep.subr.bf16.mxu1 %v1304_v21  ;;  %v310_v55 = vld [vmem:[%s2110_s3 + $0x18] sm:$0xff]  ;;  %v311_v57 = vld [vmem:[%s2110_s3 + $0x20] sm:$0xff]  ;;  %v312_v59 = vld [vmem:[%s2110_s3 + $0x28] sm:$0xff]  ;;  %s297_s13 = scalar_lea.vmem %s2830_s0, %s296_s30 }
  0x86   : > { %v318_v56 = vld [vmem:[%s2110_s3 + $0x58] sm:$0xff]  ;;  %v319_v58 = vld [vmem:[%s2110_s3 + $0x60] sm:$0xff]  ;;  %v320_v60 = vld [vmem:[%s2110_s3 + $0x68] sm:$0xff] }
  0x87   : > { %v313_v61 = vld [vmem:[%s2110_s3 + $0x30] sm:$0xff]  ;;  %v314_v63 = vld [vmem:[%s2110_s3 + $0x38] sm:$0xff]  ;;  %v355_v5 = vld [vmem:[%s297_s13] sm:$0x3] }
  0x88   : > { %1307 = vmatpush1.bf16.msra.mxu0 %v1306_v26  ;;  %1335 = vmatpush1.bf16.msra.mxu1 %v1306_v26  ;;  %v321_v62 = vld [vmem:[%s2110_s3 + $0x70] sm:$0xff]  ;;  %v322_v1 = vld [vmem:[%s2110_s3 + $0x78] sm:$0xff]  ;;  %v2206_v7 = vrot.slane %v355_v5, %v363_v6  ;;  %s2289_s3 = scalar_lea.vmem [#allocation9], %s2127_s27 }
  0x89   : > { %1309 = vmatprep.subr.bf16.mxu0 %v1308_v27  ;;  %1328 = vmatprep.subr.bf16.mxu1 %v1308_v27 }
  0x8c   : > { %1311 = vmatpush1.bf16.msra.mxu0 %v1310_v32  ;;  %1336 = vmatpush1.bf16.msra.mxu1 %v1310_v32 }
  0x8d   : > { %1313 = vmatprep.subr.bf16.mxu0 %v1312_v33  ;;  %1329 = vmatprep.subr.bf16.mxu1 %v1312_v33 }
  0x90   : > { %1315 = vmatpush1.bf16.msra.mxu0 %v1314_v38  ;;  %1337 = vmatpush1.bf16.msra.mxu1 %v1314_v38 }
  0x91   : > { %1317 = vmatprep.subr.bf16.mxu0 %v1316_v39  ;;  %1330 = vmatprep.subr.bf16.mxu1 %v1316_v39 }
  0x94   : > { %1319 = vmatpush1.bf16.msra.mxu0 %v1318_v44  ;;  %1338 = vmatpush1.bf16.msra.mxu1 %v1318_v44 }
  0x95   : > { %1321 = vmatprep.subr.bf16.mxu0 %v1320_v45  ;;  %1331 = vmatprep.subr.bf16.mxu1 %v1320_v45 }
  0x98   : > { %1323 = vmatpush1.bf16.msra.mxu0 %v1322_v48  ;;  %1339 = vmatpush1.bf16.msra.mxu1 %v1322_v48 }
  0x9b   : > { %432 = vmatmul.mubr.f32.vlgmr.msra.gmra.mrb[0].mxu0 %v307_v49  ;;  %480 = vmatmul.mubr.f32.vlgmr.msra.gmra.mrb[0].mxu1 %v315_v50 }
  0x9c   : > { %437 = vmatprep.mubr.f32.mxu0 %v1832_v0  ;;  %485 = vmatprep.mubr.f32.mxu1 %v1832_v0 }
  0x9f   : > { %438 = vmatmul.mubr.f32.gmra.mrb[2].mxu0 %v308_v51  ;;  %486 = vmatmul.mubr.f32.gmra.mrb[2].mxu1 %v316_v52 }
  0xa0   : > { %443 = vmatprep.mubr.f32.mxu0 %v1832_v0  ;;  %491 = vmatprep.mubr.f32.mxu1 %v1832_v0 }
  0xa3   : > { %444 = vmatmul.mubr.f32.gmra.mrb[4].mxu0 %v309_v53  ;;  %492 = vmatmul.mubr.f32.gmra.mrb[4].mxu1 %v317_v54 }
  0xa4   : > { %449 = vmatprep.mubr.f32.mxu0 %v1832_v0  ;;  %497 = vmatprep.mubr.f32.mxu1 %v1832_v0 }
  0xa7   : > { %450 = vmatmul.mubr.f32.gmra.mrb[6].mxu0 %v310_v55  ;;  %498 = vmatmul.mubr.f32.gmra.mrb[6].mxu1 %v318_v56 }
  0xa8   : > { %455 = vmatprep.mubr.f32.mxu0 %v1832_v0  ;;  %503 = vmatprep.mubr.f32.mxu1 %v1832_v0 }
  0xab   : > { %456 = vmatmul.mubr.f32.gmra.mrb[8].mxu0 %v311_v57  ;;  %504 = vmatmul.mubr.f32.gmra.mrb[8].mxu1 %v319_v58 }
  0xac   : > { %461 = vmatprep.mubr.f32.mxu0 %v1832_v0  ;;  %509 = vmatprep.mubr.f32.mxu1 %v1832_v0 }
  0xaf   : > { %462 = vmatmul.mubr.f32.gmra.mrb[10].mxu0 %v312_v59  ;;  %510 = vmatmul.mubr.f32.gmra.mrb[10].mxu1 %v320_v60 }
  0xb0   : > { %467 = vmatprep.mubr.f32.mxu0 %v1832_v0  ;;  %515 = vmatprep.mubr.f32.mxu1 %v1832_v0 }
  0xb3   : > { %468 = vmatmul.mubr.f32.gmra.mrb[12].mxu0 %v313_v61  ;;  %516 = vmatmul.mubr.f32.gmra.mrb[12].mxu1 %v321_v62 }
  0xb4   : > { %473 = vmatprep.mubr.f32.mxu0 %v1832_v0  ;;  %521 = vmatprep.mubr.f32.mxu1 %v1832_v0  ;;  %v360_v0 = vrot.slane %v355_v5, %v359_v4 }
  0xb7   : > { %474 = vmatmul.mubr.f32.gmra.mrb[14].mxu0 %v314_v63  ;;  %522 = vmatmul.mubr.f32.gmra.mrb[14].mxu1 %v322_v1 }
 0x16e   : > { %v433_v8 = vpop.f32.mrb[0].mxu0  ;;  %v481_v9 = vpop.f32.mrb[0].mxu1 }
 0x16f   : > { %v2208_v10 = vadd.f32 %v433_v8, %v360_v0  ;;  %v2210_v11 = vadd.f32 %v481_v9, %v360_v0  ;;  %v435_v12 = vpop.f32.mrb[1].mxu0  ;;  %v483_v13 = vpop.f32.mrb[1].mxu1 }
 0x170   : > { %v2213_v14 = vadd.f32 %v435_v12, %v2206_v7  ;;  %v2216_v15 = vadd.f32 %v483_v13, %v2206_v7  ;;  %v1833_v12 = vmov (!%p1281_p9), -inf  }
 0x171   : > { %533 = vst.msk [vmem:[#allocation2] sm:$0xff] (!%p1281_p9), %vm532_vm0, %v1833_v12  ;;  %534 = vst.msk [vmem:[#allocation2 + $0x8] sm:$0xff] (!%p1281_p9), %vm532_vm0, %v1833_v12 }
 0x172   : > { %v439_v16 = vpop.f32.mrb[2].mxu0  ;;  %v487_v17 = vpop.f32.mrb[2].mxu1  ;;  %535 = vst.msk [vmem:[#allocation2 + $0x10] sm:$0xff] (!%p1281_p9), %vm532_vm0, %v1833_v12  ;;  %536 = vst.msk [vmem:[#allocation2 + $0x18] sm:$0xff] (!%p1281_p9), %vm532_vm0, %v1833_v12 }
 0x173   : > { %v2218_v18 = vadd.f32 %v439_v16, %v360_v0  ;;  %v2220_v19 = vadd.f32 %v487_v17, %v360_v0  ;;  %v441_v20 = vpop.f32.mrb[3].mxu0  ;;  %v489_v21 = vpop.f32.mrb[3].mxu1  ;;  %537 = vst.msk [vmem:[#allocation2 + $0x20] sm:$0xff] (!%p1281_p9), %vm532_vm0, %v1833_v12  ;;  %538 = vst.msk [vmem:[#allocation2 + $0x28] sm:$0xff] (!%p1281_p9), %vm532_vm0, %v1833_v12 }
 0x174   : > { %v2223_v22 = vadd.f32 %v441_v20, %v2206_v7  ;;  %v2226_v23 = vadd.f32 %v489_v21, %v2206_v7  ;;  %539 = vst.msk [vmem:[#allocation2 + $0x30] sm:$0xff] (!%p1281_p9), %vm532_vm0, %v1833_v12  ;;  %540 = vst.msk [vmem:[#allocation2 + $0x38] sm:$0xff] (!%p1281_p9), %vm532_vm0, %v1833_v12 }
 0x175   : > { %541 = vst.msk [vmem:[#allocation2 + $0x40] sm:$0xff] (!%p1281_p9), %vm532_vm0, %v1833_v12  ;;  %542 = vst.msk [vmem:[#allocation2 + $0x48] sm:$0xff] (!%p1281_p9), %vm532_vm0, %v1833_v12 }
 0x176   : > { %v445_v24 = vpop.f32.mrb[4].mxu0  ;;  %v493_v25 = vpop.f32.mrb[4].mxu1  ;;  %543 = vst.msk [vmem:[#allocation2 + $0x50] sm:$0xff] (!%p1281_p9), %vm532_vm0, %v1833_v12  ;;  %544 = vst.msk [vmem:[#allocation2 + $0x58] sm:$0xff] (!%p1281_p9), %vm532_vm0, %v1833_v12 }
 0x177   : > { %v2228_v26 = vadd.f32 %v445_v24, %v360_v0  ;;  %v2230_v27 = vadd.f32 %v493_v25, %v360_v0  ;;  %v447_v28 = vpop.f32.mrb[5].mxu0  ;;  %v495_v29 = vpop.f32.mrb[5].mxu1  ;;  %545 = vst.msk [vmem:[#allocation2 + $0x60] sm:$0xff] (!%p1281_p9), %vm532_vm0, %v1833_v12  ;;  %546 = vst.msk [vmem:[#allocation2 + $0x68] sm:$0xff] (!%p1281_p9), %vm532_vm0, %v1833_v12 }
 0x178   : > { %v2233_v30 = vadd.f32 %v447_v28, %v2206_v7  ;;  %v2236_v31 = vadd.f32 %v495_v29, %v2206_v7  ;;  %547 = vst.msk [vmem:[#allocation2 + $0x70] sm:$0xff] (!%p1281_p9), %vm532_vm0, %v1833_v12  ;;  %548 = vst.msk [vmem:[#allocation2 + $0x78] sm:$0xff] (!%p1281_p9), %vm532_vm0, %v1833_v12 }
 0x17a   : > { %v451_v32 = vpop.f32.mrb[6].mxu0  ;;  %v499_v33 = vpop.f32.mrb[6].mxu1 }
 0x17b   : > { %v2238_v34 = vadd.f32 %v451_v32, %v360_v0  ;;  %v2240_v35 = vadd.f32 %v499_v33, %v360_v0  ;;  %v453_v36 = vpop.f32.mrb[7].mxu0  ;;  %v501_v37 = vpop.f32.mrb[7].mxu1 }
 0x17c   : > { %v2243_v38 = vadd.f32 %v453_v36, %v2206_v7  ;;  %v2246_v39 = vadd.f32 %v501_v37, %v2206_v7 }
 0x17e   : > { %v457_v40 = vpop.f32.mrb[8].mxu0  ;;  %v505_v41 = vpop.f32.mrb[8].mxu1 }
 0x17f   : > { %v2248_v42 = vadd.f32 %v457_v40, %v360_v0  ;;  %v2250_v43 = vadd.f32 %v505_v41, %v360_v0  ;;  %v459_v44 = vpop.f32.mrb[9].mxu0  ;;  %v507_v45 = vpop.f32.mrb[9].mxu1 }
 0x180   : > { %v2253_v46 = vadd.f32 %v459_v44, %v2206_v7  ;;  %v2256_v47 = vadd.f32 %v507_v45, %v2206_v7 }
 0x182   : > { %v463_v48 = vpop.f32.mrb[10].mxu0  ;;  %v511_v49 = vpop.f32.mrb[10].mxu1 }
 0x183   : > { %v2258_v50 = vadd.f32 %v463_v48, %v360_v0  ;;  %v2260_v51 = vadd.f32 %v511_v49, %v360_v0  ;;  %v465_v52 = vpop.f32.mrb[11].mxu0  ;;  %v513_v53 = vpop.f32.mrb[11].mxu1 }
 0x184   : > { %v2263_v54 = vadd.f32 %v465_v52, %v2206_v7  ;;  %v2266_v55 = vadd.f32 %v513_v53, %v2206_v7 }
 0x186   : > { %v469_v56 = vpop.f32.mrb[12].mxu0  ;;  %v517_v57 = vpop.f32.mrb[12].mxu1  ;;  %531 = sbr.rel (%p1281_p9) target bundleno = 404 (0x194), region = 44 }
 0x187   : > { %v2268_v58 = vadd.f32 %v469_v56, %v360_v0  ;;  %v2270_v59 = vadd.f32 %v517_v57, %v360_v0  ;;  %v471_v60 = vpop.f32.mrb[13].mxu0  ;;  %v519_v61 = vpop.f32.mrb[13].mxu1 }
 0x188   : > { %v2273_v62 = vadd.f32 %v471_v60, %v2206_v7  ;;  %v2276_v63 = vadd.f32 %v519_v61, %v2206_v7 }
 0x18a   : > { %v475_v1 = vpop.f32.mrb[14].mxu0  ;;  %v523_v2 = vpop.f32.mrb[14].mxu1 }
 0x18b   : > { %v2278_v3 = vadd.f32 %v475_v1, %v360_v0  ;;  %v2280_v4 = vadd.f32 %v523_v2, %v360_v0  ;;  %v477_v5 = vpop.f32.mrb[15].mxu0  ;;  %v525_v6 = vpop.f32.mrb[15].mxu1  ;;  %v1834_v0 = vmov (!%p1281_p9), 0.0  }
 0x18c   : > { %v2283_v8 = vadd.f32 %v477_v5, %v2206_v7  ;;  %v2286_v9 = vadd.f32 %v525_v6, %v2206_v7  ;;  %549 = vst.msk [vmem:[#allocation3] sm:$0xff] (!%p1281_p9), %vm532_vm0, %v1834_v0  ;;  %550 = vst.msk [vmem:[#allocation3 + $0x8] sm:$0xff] (!%p1281_p9), %vm532_vm0, %v1834_v0 }
 0x18d   : > { %551 = vst.msk [vmem:[#allocation3 + $0x10] sm:$0xff] %vm532_vm0, %v1834_v0  ;;  %552 = vst.msk [vmem:[#allocation3 + $0x18] sm:$0xff] %vm532_vm0, %v1834_v0 }
 0x18e   : > { %553 = vst.msk [vmem:[#allocation3 + $0x20] sm:$0xff] %vm532_vm0, %v1834_v0  ;;  %554 = vst.msk [vmem:[#allocation3 + $0x28] sm:$0xff] %vm532_vm0, %v1834_v0 }
 0x18f   : > { %555 = vst.msk [vmem:[#allocation3 + $0x30] sm:$0xff] %vm532_vm0, %v1834_v0  ;;  %556 = vst.msk [vmem:[#allocation3 + $0x38] sm:$0xff] %vm532_vm0, %v1834_v0 }
 0x190   : > { %557 = vst.msk [vmem:[#allocation3 + $0x40] sm:$0xff] %vm532_vm0, %v1834_v0  ;;  %558 = vst.msk [vmem:[#allocation3 + $0x48] sm:$0xff] %vm532_vm0, %v1834_v0 }
 0x191   : > { %559 = vst.msk [vmem:[#allocation3 + $0x50] sm:$0xff] %vm532_vm0, %v1834_v0  ;;  %560 = vst.msk [vmem:[#allocation3 + $0x58] sm:$0xff] %vm532_vm0, %v1834_v0 }
 0x192   : > { %561 = vst.msk [vmem:[#allocation3 + $0x60] sm:$0xff] %vm532_vm0, %v1834_v0  ;;  %562 = vst.msk [vmem:[#allocation3 + $0x68] sm:$0xff] %vm532_vm0, %v1834_v0 }
 0x193   : > { %563 = vst.msk [vmem:[#allocation3 + $0x70] sm:$0xff] %vm532_vm0, %v1834_v0  ;;  %564 = vst.msk [vmem:[#allocation3 + $0x78] sm:$0xff] %vm532_vm0, %v1834_v0 }
 0x194 PF: > { %v587_v7 = vmax.f32 %v2228_v26, %v2233_v30  ;;  %v581_v13 = vmax.f32 %v2208_v10, %v2213_v14  ;;  %998 = vst [vmem:[%s2289_s3] sm:$0xff] %v2208_v10  ;;  %999 = vst [vmem:[%s2289_s3 + $0x8] sm:$0xff] %v2213_v14  ;;  %v590_v16 = vmax.f32 %v2238_v34, %v2243_v38  ;;  %v1835_v36 = vmov 0   ;;  %v2420_v45 = vld [vmem:[#allocation2 + $0x10] sm:$0xff]  ;;  %v2422_v48 = vld [vmem:[#allocation2] sm:$0xff]  ;;  %s2844_s14 = sld [smem:[#allocation18_spill]]  ;;  %s1291_s21 = sshll.u32 %s1811_s25, 6 }
 0x195   : > { %1000 = vst [vmem:[%s2289_s3 + $0x10] sm:$0xff] %v2218_v18  ;;  %1001 = vst [vmem:[%s2289_s3 + $0x18] sm:$0xff] %v2223_v22  ;;  %v584_v17 = vmax.f32 %v2218_v18, %v2223_v22  ;;  %v596_v20 = vmax.f32 %v2258_v50, %v2263_v54  ;;  %v593_v21 = vmax.f32 %v2248_v42, %v2253_v46  ;;  %1483 = vset.pattern.permute.xlu0 %v1835_v36  ;;  %vm965_vm1 = vcmask 7168   ;;  %v2430_v57 = vld [vmem:[#allocation2 + $0x18] sm:$0xff]  ;;  %v2432_v60 = vld [vmem:[#allocation2 + $0x8] sm:$0xff]  ;;  %s1113_s27 = sadd.s32 %s1291_s21, %s2199_s5  ;;  %s1116_s6 = sshll.u32 %s2289_s3, 4  ;;  %s2588_s6 = int_to_ptr.vmem [resolvable:$true] %s1116_s6 }
 0x196   : > { %1002 = vst [vmem:[%s2289_s3 + $0x20] sm:$0xff] %v2228_v26  ;;  %1003 = vst [vmem:[%s2289_s3 + $0x28] sm:$0xff] %v2233_v30  ;;  %588 = vmax.xlane.f32.xlu1 %v587_v7  ;;  %582 = vmax.xlane.f32.xlu0 %v581_v13  ;;  %v602_v24 = vmax.f32 %v2278_v3, %v2283_v8  ;;  %v599_v25 = vmax.f32 %v2268_v58, %v2273_v62  ;;  %v2445_v6 = vld [vmem:[#allocation2 + $0x28] sm:$0xff]  ;;  %v2447_v12 = vld [vmem:[#allocation2 + $0x20] sm:$0xff]  ;;  %s1286_s18 = sshll.u32 %s1113_s27, 7  ;;  %s2845_s24 = sld [smem:[#allocation34_spill]] }
 0x197   : > { %1004 = vst [vmem:[%s2289_s3 + $0x30] sm:$0xff] %v2238_v34  ;;  %1005 = vst [vmem:[%s2289_s3 + $0x38] sm:$0xff] %v2243_v38  ;;  %v608_v28 = vmax.f32 %v2220_v19, %v2226_v23  ;;  %v605_v29 = vmax.f32 %v2210_v11, %v2216_v15  ;;  %v614_v32 = vmax.f32 %v2240_v35, %v2246_v39  ;;  %1484 = vset.pattern.permute.xlu1 %v1835_v36  ;;  %s2592_s12 = scalar_lea.sflag [#allocation6], %s282_s8  ;;  %s1673_s0 = scalar_lea.vmem %s2588_s6, 4096 }
 0x198   : > { %1006 = vst [vmem:[%s2289_s3 + $0x40] sm:$0xff] %v2248_v42  ;;  %1007 = vst [vmem:[%s2289_s3 + $0x48] sm:$0xff] %v2253_v46  ;;  %v611_v33 = vmax.f32 %v2230_v27, %v2236_v31  ;;  %v620_v37 = vmax.f32 %v2260_v51, %v2266_v55  ;;  %v617_v40 = vmax.f32 %v2250_v43, %v2256_v47  ;;  %p1674_p0 = scmp.ne.s32.totalorder %s2588_s6, %s1673_s0  ;;  %s1836_s25 = smov [#allocation9]  }
 0x199   : > { %1008 = vst [vmem:[%s2289_s3 + $0x50] sm:$0xff] %v2258_v50  ;;  %1009 = vst [vmem:[%s2289_s3 + $0x58] sm:$0xff] %v2263_v54  ;;  %v626_v41 = vmax.f32 %v2280_v4, %v2286_v9  ;;  %v623_v44 = vmax.f32 %v2270_v59, %v2276_v63  ;;  %s1677_s5 = sshll.u32 %s1836_s25, 4  ;;  %s1678_s5 = int_to_ptr.vmem [resolvable:$false] %s1677_s5 }
 0x19a   : > { %1010 = vst [vmem:[%s2289_s3 + $0x60] sm:$0xff] %v2268_v58  ;;  %1011 = vst [vmem:[%s2289_s3 + $0x68] sm:$0xff] %v2273_v62  ;;  %591 = vmax.xlane.f32.xlu1 %v590_v16  ;;  %585 = vmax.xlane.f32.xlu0 %v584_v17  ;;  %v2460_v17 = vld [vmem:[#allocation2 + $0x38] sm:$0xff]  ;;  %p2847_p4 = scmp.ne.s32.totalorder %s2844_s14, 0  ;;  %s1679_s13 = scalar_lea.vmem %s1678_s5, 8192 }
 0x19b   : > { %1012 = vst [vmem:[%s2289_s3 + $0x70] sm:$0xff] %v2278_v3  ;;  %1013 = vst [vmem:[%s2289_s3 + $0x78] sm:$0xff] %v2283_v8  ;;  %p1680_p11 = scmp.lt.s32.totalorder %s2588_s6, %s1678_s5  ;;  %p1681_p2 = scmp.lt.s32.totalorder %s1679_s13, %s1673_s0 }
 0x19c   : > { %1014 = vst [vmem:[%s2289_s3 + $0x80] sm:$0xff] %v2210_v11  ;;  %1015 = vst [vmem:[%s2289_s3 + $0x88] sm:$0xff] %v2216_v15  ;;  %s2846_s30 = smov %s2845_s24  ;;  %s2586_s29 = scalar_lea.hbm %s2845_s24, %s1286_s18 }
 0x19d   : > { %1016 = vst [vmem:[%s2289_s3 + $0x90] sm:$0xff] %v2220_v19  ;;  %1017 = vst [vmem:[%s2289_s3 + $0x98] sm:$0xff] %v2226_v23  ;;  %p1675_p10 = pnand %p1674_p0, %p2847_p4  ;;  %p1682_p5 = por %p1681_p2, %p1680_p11 }
 0x19e   : > { %1018 = vst [vmem:[%s2289_s3 + $0xa0] sm:$0xff] %v2230_v27  ;;  %1019 = vst [vmem:[%s2289_s3 + $0xa8] sm:$0xff] %v2236_v31  ;;  %597 = vmax.xlane.f32.xlu1 %v596_v20  ;;  %594 = vmax.xlane.f32.xlu0 %v593_v21  ;;  %v2462_v20 = vld [vmem:[#allocation2 + $0x30] sm:$0xff] }
 0x19f   : > { %1020 = vst [vmem:[%s2289_s3 + $0xb0] sm:$0xff] %v2240_v35  ;;  %1021 = vst [vmem:[%s2289_s3 + $0xb8] sm:$0xff] %v2246_v39  ;;  %p1676_p8 = pneg %p1675_p10 }
 0x1a0   : > { %1022 = vst [vmem:[%s2289_s3 + $0xc0] sm:$0xff] %v2250_v43  ;;  %1023 = vst [vmem:[%s2289_s3 + $0xc8] sm:$0xff] %v2256_v47 }
 0x1a1   : > { %1024 = vst [vmem:[%s2289_s3 + $0xd0] sm:$0xff] %v2260_v51  ;;  %1025 = vst [vmem:[%s2289_s3 + $0xd8] sm:$0xff] %v2266_v55  ;;  %p1683_p3 = pnand %p1682_p5, %p1676_p8 }
 0x1a2   : > { %1026 = vst [vmem:[%s2289_s3 + $0xe0] sm:$0xff] %v2270_v59  ;;  %1027 = vst [vmem:[%s2289_s3 + $0xe8] sm:$0xff] %v2276_v63  ;;  %603 = vmax.xlane.f32.xlu1 %v602_v24  ;;  %600 = vmax.xlane.f32.xlu0 %v599_v25 }
 0x1a3   : > { %1028 = vst [vmem:[%s2289_s3 + $0xf0] sm:$0xff] %v2280_v4  ;;  %1029 = vst [vmem:[%s2289_s3 + $0xf8] sm:$0xff] %v2286_v9 }
 0x1a6   : > { %609 = vmax.xlane.f32.xlu1 %v608_v28  ;;  %606 = vmax.xlane.f32.xlu0 %v605_v29  ;;  %v2475_v29 = vld [vmem:[#allocation2 + $0x48] sm:$0xff] }
 0x1aa   : > { %615 = vmax.xlane.f32.xlu1 %v614_v32  ;;  %612 = vmax.xlane.f32.xlu0 %v611_v33  ;;  %v2477_v32 = vld [vmem:[#allocation2 + $0x40] sm:$0xff] }
 0x1ab   : > { %2831 = vst [vmem:[#allocation19_spill] sm:$0xff] %v2477_v32 }
 0x1ae   : > { %621 = vmax.xlane.f32.xlu1 %v620_v37  ;;  %618 = vmax.xlane.f32.xlu0 %v617_v40 }
 0x1b2   : > { %627 = vmax.xlane.f32.xlu1 %v626_v41  ;;  %624 = vmax.xlane.f32.xlu0 %v623_v44  ;;  %v2490_v41 = vld [vmem:[#allocation2 + $0x58] sm:$0xff]  ;;  %v2492_v44 = vld [vmem:[#allocation2 + $0x50] sm:$0xff] }
 0x1b3   : > { %2832 = vst [vmem:[#allocation20_spill] sm:$0xff] %v2490_v41  ;;  %2833 = vst [vmem:[#allocation21_spill] sm:$0xff] %v2492_v44 }
 0x223   : > { %v589_v49 = vpop.xlane.xlu1 %588  ;;  %v583_v52 = vpop.xlane.xlu0 %582 }
 0x224   : > { %v2425_v53 = vmax.f32 %v2420_v45, %v589_v49  ;;  %v2428_v56 = vmax.f32 %v2422_v48, %v583_v52 }
 0x226   : > { %968 = vst.msk [vmem:[#allocation2 + $0x10] sm:$0xff] %vm965_vm1, %v2425_v53  ;;  %966 = vst.msk [vmem:[#allocation2] sm:$0xff] %vm965_vm1, %v2428_v56  ;;  %727 = vperm.xlu0 %1483, %v2428_v56  }
 0x227   : > { %v592_v61 = vpop.xlane.xlu1 %591  ;;  %v586_v1 = vpop.xlane.xlu0 %585 }
 0x228   : > { %v2440_v2 = vmax.f32 %v2430_v57, %v592_v61  ;;  %v2443_v5 = vmax.f32 %v2432_v60, %v586_v1 }
 0x22a   : > { %969 = vst.msk [vmem:[#allocation2 + $0x18] sm:$0xff] %vm965_vm1, %v2440_v2  ;;  %967 = vst.msk [vmem:[#allocation2 + $0x8] sm:$0xff] %vm965_vm1, %v2443_v5  ;;  %732 = vperm.xlu1 %1484, %v2443_v5  }
 0x22b   : > { %v598_v0 = vpop.xlane.xlu1 %597  ;;  %v595_v7 = vpop.xlane.xlu0 %594 }
 0x22c   : > { %v2455_v13 = vmax.f32 %v2445_v6, %v598_v0  ;;  %v2458_v16 = vmax.f32 %v2447_v12, %v595_v7  ;;  %v2506_v0 = vld [vmem:[#allocation2 + $0x68] sm:$0xff]  ;;  %v2508_v7 = vld [vmem:[#allocation2 + $0x60] sm:$0xff] }
 0x22d   : > { %2836 = vst [vmem:[#allocation24_spill] sm:$0xff] %v2506_v0  ;;  %2837 = vst [vmem:[#allocation25_spill] sm:$0xff] %v2508_v7 }
 0x22e   : > { %971 = vst.msk [vmem:[#allocation2 + $0x28] sm:$0xff] %vm965_vm1, %v2455_v13  ;;  %737 = vperm.xlu1 %1484, %v2425_v53   ;;  %970 = vst.msk [vmem:[#allocation2 + $0x20] sm:$0xff] %vm965_vm1, %v2458_v16 }
 0x22f   : > { %v604_v21 = vpop.xlane.xlu1 %603  ;;  %v601_v24 = vpop.xlane.xlu0 %600 }
 0x230   : > { %v2470_v25 = vmax.f32 %v2460_v17, %v604_v21  ;;  %v2473_v28 = vmax.f32 %v2462_v20, %v601_v24 }
 0x232   : > { %973 = vst.msk [vmem:[#allocation2 + $0x38] sm:$0xff] %vm965_vm1, %v2470_v25  ;;  %742 = vperm.xlu1 %1484, %v2440_v2   ;;  %972 = vst.msk [vmem:[#allocation2 + $0x30] sm:$0xff] %vm965_vm1, %v2473_v28 }
 0x233   : > { %v610_v33 = vpop.xlane.xlu1 %609  ;;  %v607_v36 = vpop.xlane.xlu0 %606 }
 0x234   : > { %v2485_v37 = vmax.f32 %v2475_v29, %v610_v33  ;;  %v2488_v40 = vmax.f32 %v2477_v32, %v607_v36 }
 0x236   : > { %975 = vst.msk [vmem:[#allocation2 + $0x48] sm:$0xff] %vm965_vm1, %v2485_v37  ;;  %747 = vperm.xlu1 %1484, %v2458_v16   ;;  %772 = vperm.xlu0 %1483, %v2485_v37   ;;  %974 = vst.msk [vmem:[#allocation2 + $0x40] sm:$0xff] %vm965_vm1, %v2488_v40 }
 0x237   : > { %v616_v49 = vpop.xlane.xlu1 %615  ;;  %v613_v52 = vpop.xlane.xlu0 %612 }
 0x238   : > { %v2501_v61 = vmax.f32 %v2490_v41, %v616_v49  ;;  %v2504_v1 = vmax.f32 %v2492_v44, %v613_v52  ;;  %v2522_v49 = vld [vmem:[#allocation2 + $0x78] sm:$0xff]  ;;  %v2524_v52 = vld [vmem:[#allocation2 + $0x70] sm:$0xff] }
 0x239   : > { %2840 = vst [vmem:[#allocation28_spill] sm:$0xff] %v2522_v49  ;;  %2841 = vst [vmem:[#allocation29_spill] sm:$0xff] %v2524_v52 }
 0x23a   : > { %2834 = vst [vmem:[#allocation22_spill] sm:$0xff] %v2501_v61  ;;  %2835 = vst [vmem:[#allocation23_spill] sm:$0xff] %v2504_v1  ;;  %752 = vperm.xlu1 %1484, %v2455_v13   ;;  %782 = vperm.xlu0 %1483, %v2501_v61  }
 0x23b   : > { %977 = vst.msk [vmem:[#allocation2 + $0x58] sm:$0xff] %vm965_vm1, %v2501_v61  ;;  %976 = vst.msk [vmem:[#allocation2 + $0x50] sm:$0xff] %vm965_vm1, %v2504_v1  ;;  %v622_v21 = vpop.xlane.xlu1 %621  ;;  %v619_v24 = vpop.xlane.xlu0 %618 }
 0x23c   : > { %v2517_v33 = vmax.f32 %v2506_v0, %v622_v21  ;;  %v2520_v36 = vmax.f32 %v2508_v7, %v619_v24 }
 0x23e   : > { %2838 = vst [vmem:[#allocation26_spill] sm:$0xff] %v2517_v33  ;;  %2839 = vst [vmem:[#allocation27_spill] sm:$0xff] %v2520_v36  ;;  %757 = vperm.xlu1 %1484, %v2473_v28   ;;  %792 = vperm.xlu0 %1483, %v2517_v33  }
 0x23f   : > { %979 = vst.msk [vmem:[#allocation2 + $0x68] sm:$0xff] %vm965_vm1, %v2517_v33  ;;  %978 = vst.msk [vmem:[#allocation2 + $0x60] sm:$0xff] %vm965_vm1, %v2520_v36  ;;  %v628_v44 = vpop.xlane.xlu1 %627  ;;  %v625_v21 = vpop.xlane.xlu0 %624 }
 0x240   : > { %v2533_v0 = vmax.f32 %v2522_v49, %v628_v44  ;;  %v2536_v24 = vmax.f32 %v2524_v52, %v625_v21 }
 0x242   : > { %2842 = vst [vmem:[#allocation30_spill] sm:$0xff] %v2533_v0  ;;  %2843 = vst [vmem:[#allocation31_spill] sm:$0xff] %v2536_v24  ;;  %762 = vperm.xlu1 %1484, %v2470_v25   ;;  %802 = vperm.xlu0 %1483, %v2533_v0  }
 0x243   : > { %981 = vst.msk [vmem:[#allocation2 + $0x78] sm:$0xff] %vm965_vm1, %v2533_v0  ;;  %980 = vst.msk [vmem:[#allocation2 + $0x70] sm:$0xff] %vm965_vm1, %v2536_v24 }
 0x246   : > { %767 = vperm.xlu1 %1484, %v2488_v40  }
 0x24a   : > { %777 = vperm.xlu1 %1484, %v2504_v1  }
 0x24e   : > { %787 = vperm.xlu1 %1484, %v2520_v36  }
 0x252   : > { %797 = vperm.xlu1 %1484, %v2536_v24  }
 0x2a5   : > { %v728_v44 = vpop.permute.xlu0 %727 }
 0x2a6   : > { %v805_v21 = vsub.f32 %v2208_v10, %v728_v44  ;;  %v806_v52 = vsub.f32 %v2213_v14, %v728_v44 }
 0x2a8   : > { %v837_v49 = vmul.f32 1.442695, %v805_v21  ;;  %v839_v7 = vmul.f32 1.442695, %v806_v52 }
 0x2a9   : > { %v733_v33 = vpop.permute.xlu1 %732 }
 0x2aa   : > { %1485 = vpow2.f32 %v837_v49  ;;  %v807_v0 = vsub.f32 %v2218_v18, %v733_v33  ;;  %v808_v41 = vsub.f32 %v2223_v22, %v733_v33 }
 0x2ab   : > { %1487 = vpow2.f32 %v839_v7 }
 0x2ac   : > { %v841_v61 = vmul.f32 1.442695, %v807_v0  ;;  %v843_v1 = vmul.f32 1.442695, %v808_v41 }
 0x2ad   : > { %v738_v32 = vpop.permute.xlu1 %737 }
 0x2ae   : > { %1489 = vpow2.f32 %v841_v61  ;;  %v809_v24 = vsub.f32 %v2228_v26, %v738_v32  ;;  %v810_v36 = vsub.f32 %v2233_v30, %v738_v32 }
 0x2af   : > { %1491 = vpow2.f32 %v843_v1 }
 0x2b0   : > { %v845_v10 = vmul.f32 1.442695, %v809_v24  ;;  %v847_v14 = vmul.f32 1.442695, %v810_v36 }
 0x2b1   : > { %v743_v44 = vpop.permute.xlu1 %742 }
 0x2b2   : > { %1493 = vpow2.f32 %v845_v10  ;;  %v811_v49 = vsub.f32 %v2238_v34, %v743_v44  ;;  %v812_v18 = vsub.f32 %v2243_v38, %v743_v44 }
 0x2b3   : > { %1495 = vpow2.f32 %v847_v14 }
 0x2b4   : > { %v1486_v22 = vpop.eup %1485  ;;  %v849_v7 = vmul.f32 1.442695, %v811_v49  ;;  %v851_v0 = vmul.f32 1.442695, %v812_v18 }
 0x2b5   : > { %v1488_v41 = vpop.eup %1487  ;;  %v748_v33 = vpop.permute.xlu1 %747 }
 0x2b6   : > { %1497 = vpow2.f32 %v849_v7  ;;  %v813_v26 = vsub.f32 %v2248_v42, %v748_v33  ;;  %v814_v30 = vsub.f32 %v2253_v46, %v748_v33  ;;  %v773_v32 = vpop.permute.xlu0 %772  ;;  %v901_v61 = vadd.f32 %v1488_v41, %v1486_v22 }
 0x2b7   : > { %1499 = vpow2.f32 %v851_v0  ;;  %v823_v49 = vsub.f32 %v2220_v19, %v773_v32 }
 0x2b8   : > { %v1490_v1 = vpop.eup %1489  ;;  %v853_v36 = vmul.f32 1.442695, %v813_v26  ;;  %v855_v52 = vmul.f32 1.442695, %v814_v30  ;;  %902 = vadd.xlane.f32.xlu1 %v901_v61 }
 0x2b9   : > { %v1492_v34 = vpop.eup %1491  ;;  %v753_v38 = vpop.permute.xlu1 %752  ;;  %v873_v61 = vmul.f32 1.442695, %v823_v49 }
 0x2ba   : > { %1501 = vpow2.f32 %v853_v36  ;;  %v815_v24 = vsub.f32 %v2258_v50, %v753_v38  ;;  %v816_v21 = vsub.f32 %v2263_v54, %v753_v38  ;;  %v904_v10 = vadd.f32 %v1492_v34, %v1490_v1  ;;  %v783_v18 = vpop.permute.xlu0 %782 }
 0x2bb   : > { %1503 = vpow2.f32 %v855_v52  ;;  %v824_v54 = vsub.f32 %v2226_v23, %v773_v32  ;;  %v827_v1 = vsub.f32 %v2240_v35, %v783_v18 }
 0x2bc   : > { %v1494_v14 = vpop.eup %1493  ;;  %v857_v42 = vmul.f32 1.442695, %v815_v24  ;;  %v859_v44 = vmul.f32 1.442695, %v816_v21  ;;  %905 = vadd.xlane.f32.xlu0 %v904_v10  ;;  %v828_v21 = vsub.f32 %v2246_v39, %v783_v18 }
 0x2bd   : > { %v1496_v46 = vpop.eup %1495  ;;  %v758_v22 = vpop.permute.xlu1 %757  ;;  %v875_v38 = vmul.f32 1.442695, %v824_v54  ;;  %v881_v10 = vmul.f32 1.442695, %v827_v1 }
 0x2be   : > { %1505 = vpow2.f32 %v857_v42  ;;  %v817_v7 = vsub.f32 %v2268_v58, %v758_v22  ;;  %v818_v0 = vsub.f32 %v2273_v62, %v758_v22  ;;  %v907_v50 = vadd.f32 %v1496_v46, %v1494_v14  ;;  %v793_v62 = vpop.permute.xlu0 %792 }
 0x2bf   : > { %1507 = vpow2.f32 %v859_v44  ;;  %v831_v44 = vsub.f32 %v2260_v51, %v793_v62  ;;  %v883_v39 = vmul.f32 1.442695, %v828_v21  ;;  %v832_v18 = vsub.f32 %v2266_v55, %v793_v62 }
 0x2c0   : > { %v1498_v41 = vpop.eup %1497  ;;  %v861_v33 = vmul.f32 1.442695, %v817_v7  ;;  %v863_v26 = vmul.f32 1.442695, %v818_v0  ;;  %908 = vadd.xlane.f32.xlu0 %v907_v50 }
 0x2c1   : > { %v1500_v30 = vpop.eup %1499  ;;  %v763_v19 = vpop.permute.xlu1 %762  ;;  %v889_v54 = vmul.f32 1.442695, %v831_v44 }
 0x2c2   : > { %1509 = vpow2.f32 %v861_v33  ;;  %v819_v36 = vsub.f32 %v2278_v3, %v763_v19  ;;  %v820_v58 = vsub.f32 %v2283_v8, %v763_v19  ;;  %v910_v52 = vadd.f32 %v1500_v30, %v1498_v41  ;;  %v803_v7 = vpop.permute.xlu0 %802 }
 0x2c3   : > { %1511 = vpow2.f32 %v863_v26  ;;  %v835_v51 = vsub.f32 %v2280_v4, %v803_v7  ;;  %v836_v55 = vsub.f32 %v2286_v9, %v803_v7 }
 0x2c4   : > { %v1502_v34 = vpop.eup %1501  ;;  %v865_v24 = vmul.f32 1.442695, %v819_v36  ;;  %v867_v23 = vmul.f32 1.442695, %v820_v58  ;;  %1513 = vpow2.f32 %v873_v61  ;;  %911 = vadd.xlane.f32.xlu1 %v910_v52  ;;  %v891_v61 = vmul.f32 1.442695, %v832_v18 }
 0x2c5   : > { %v1504_v32 = vpop.eup %1503  ;;  %v768_v35 = vpop.permute.xlu1 %767  ;;  %v897_v4 = vmul.f32 1.442695, %v835_v51 }
 0x2c6   : > { %1515 = vpow2.f32 %v865_v24  ;;  %v821_v14 = vsub.f32 %v2210_v11, %v768_v35  ;;  %v822_v3 = vsub.f32 %v2216_v15, %v768_v35  ;;  %v913_v8 = vadd.f32 %v1504_v32, %v1502_v34 }
 0x2c7   : > { %1517 = vpow2.f32 %v867_v23 }
 0x2c8   : > { %v1506_v42 = vpop.eup %1505  ;;  %1519 = vpow2.f32 %v875_v38  ;;  %v869_v46 = vmul.f32 1.442695, %v821_v14  ;;  %v871_v49 = vmul.f32 1.442695, %v822_v3  ;;  %914 = vadd.xlane.f32.xlu0 %v913_v8  ;;  %v899_v38 = vmul.f32 1.442695, %v836_v55 }
 0x2c9   : > { %v1508_v22 = vpop.eup %1507  ;;  %1521 = vpow2.f32 %v881_v10  ;;  %v778_v0 = vpop.permute.xlu1 %777 }
 0x2ca   : > { %1523 = vpow2.f32 %v869_v46  ;;  %v825_v11 = vsub.f32 %v2230_v27, %v778_v0  ;;  %v826_v15 = vsub.f32 %v2236_v31, %v778_v0  ;;  %v916_v50 = vadd.f32 %v1508_v22, %v1506_v42 }
 0x2cb   : > { %1525 = vpow2.f32 %v871_v49 }
 0x2cc   : > { %v1510_v41 = vpop.eup %1509  ;;  %v877_v33 = vmul.f32 1.442695, %v825_v11  ;;  %v879_v26 = vmul.f32 1.442695, %v826_v15  ;;  %917 = vadd.xlane.f32.xlu1 %v916_v50  ;;  %1527 = vpow2.f32 %v883_v39 }
 0x2cd   : > { %v1512_v30 = vpop.eup %1511  ;;  %v788_v1 = vpop.permute.xlu1 %787 }
 0x2ce   : > { %1529 = vpow2.f32 %v877_v33  ;;  %v829_v27 = vsub.f32 %v2250_v43, %v788_v1  ;;  %v830_v31 = vsub.f32 %v2256_v47, %v788_v1  ;;  %v919_v19 = vadd.f32 %v1512_v30, %v1510_v41  ;;  %v1514_v36 = vpop.eup %1513 }
 0x2cf   : > { %1531 = vpow2.f32 %v879_v26 }
 0x2d0   : > { %v1516_v58 = vpop.eup %1515  ;;  %1533 = vpow2.f32 %v889_v54  ;;  %v885_v62 = vmul.f32 1.442695, %v829_v27  ;;  %v887_v52 = vmul.f32 1.442695, %v830_v31  ;;  %920 = vadd.xlane.f32.xlu0 %v919_v19 }
 0x2d1   : > { %v1518_v34 = vpop.eup %1517  ;;  %1535 = vpow2.f32 %v891_v61  ;;  %v798_v24 = vpop.permute.xlu1 %797 }
 0x2d2   : > { %v1520_v9 = vpop.eup %1519  ;;  %1537 = vpow2.f32 %v885_v62  ;;  %v833_v23 = vsub.f32 %v2270_v59, %v798_v24  ;;  %v834_v43 = vsub.f32 %v2276_v63, %v798_v24  ;;  %v922_v47 = vadd.f32 %v1518_v34, %v1516_v58 }
 0x2d3   : > { %v1522_v32 = vpop.eup %1521  ;;  %1539 = vpow2.f32 %v887_v52  ;;  %v928_v8 = vadd.f32 %v1520_v9, %v1514_v36 }
 0x2d4   : > { %v1524_v21 = vpop.eup %1523  ;;  %1541 = vpow2.f32 %v897_v4  ;;  %v893_v10 = vmul.f32 1.442695, %v833_v23  ;;  %v895_v35 = vmul.f32 1.442695, %v834_v43  ;;  %923 = vadd.xlane.f32.xlu1 %v922_v47 }
 0x2d5   : > { %v1526_v14 = vpop.eup %1525  ;;  %1543 = vpow2.f32 %v899_v38 }
 0x2d6   : > { %1545 = vpow2.f32 %v893_v10  ;;  %v925_v3 = vadd.f32 %v1526_v14, %v1524_v21  ;;  %v1528_v42 = vpop.eup %1527 }
 0x2d7   : > { %1547 = vpow2.f32 %v895_v35  ;;  %v934_v49 = vadd.f32 %v1528_v42, %v1522_v32 }
 0x2d8   : > { %v1530_v44 = vpop.eup %1529  ;;  %926 = vadd.xlane.f32.xlu0 %v925_v3  ;;  %929 = vadd.xlane.f32.xlu1 %v928_v8 }
 0x2d9   : > { %v1532_v59 = vpop.eup %1531 }
 0x2da   : > { %v1534_v63 = vpop.eup %1533  ;;  %v931_v46 = vadd.f32 %v1532_v59, %v1530_v44 }
 0x2db   : > { %v1536_v22 = vpop.eup %1535 }
 0x2dc   : > { %v1538_v39 = vpop.eup %1537  ;;  %932 = vadd.xlane.f32.xlu0 %v931_v46  ;;  %935 = vadd.xlane.f32.xlu1 %v934_v49  ;;  %v940_v11 = vadd.f32 %v1536_v22, %v1534_v63 }
 0x2dd   : > { %v1540_v18 = vpop.eup %1539 }
 0x2de   : > { %v1542_v7 = vpop.eup %1541  ;;  %v937_v0 = vadd.f32 %v1540_v18, %v1538_v39 }
 0x2df   : > { %v1544_v15 = vpop.eup %1543 }
 0x2e0   : > { %v1546_v50 = vpop.eup %1545  ;;  %938 = vadd.xlane.f32.xlu0 %v937_v0  ;;  %941 = vadd.xlane.f32.xlu1 %v940_v11  ;;  %v946_v51 = vadd.f32 %v1544_v15, %v1542_v7 }
 0x2e1   : > { %v1548_v41 = vpop.eup %1547 }
 0x2e2   : > { %v943_v54 = vadd.f32 %v1548_v41, %v1546_v50 }
 0x2e4   : > { %944 = vadd.xlane.f32.xlu0 %v943_v54  ;;  %947 = vadd.xlane.f32.xlu1 %v946_v51 }
 0x2e5   : > { %1686 = shalt.err (!%p1683_p3)
}
 0x2e6   : > { %s1687_s8 = scalar_lea.hbm %s2586_s29, 4096  ;;  %s1691_s27 = scalar_lea.hbm %s2846_s30, 16384 }
 0x2e7   : > { %p1688_p7 = scmp.ne.s32.totalorder %s2586_s29, %s1687_s8  ;;  %p1692_p1 = scmp.lt.u32.totalorder %s2586_s29, %s2846_s30 }
 0x2e8   : > { %p1693_p12 = scmp.lt.u32.totalorder %s1691_s27, %s1687_s8  ;;  %p1695_p0 = scmp.lt.u32.totalorder %s1687_s8, %s2586_s29 }
 0x2e9   : > { %p1689_p13 = pnand %p1688_p7, %p2847_p4 }
 0x2ea   : > { %p1694_p9 = por %p1693_p12, %p1692_p1 }
 0x2eb   : > { %p1690_p6 = pneg %p1689_p13 }
 0x2ec   : > { %p1696_p10 = por %p1695_p0, %p1694_p9 }
 0x2ee   : > { %p1697_p8 = pnand %p1696_p10, %p1690_p6 }
 0x2f0   : > { %1700 = shalt.err (!%p1697_p8)
}
 0x2f1   : > { %s1837_s9 = smov 256   ;;  %s1838_s24 = smov 512   ;;  %v661_v33 = vsub.f32 %v2422_v48, %v2428_v56  ;;  %v662_v30 = vsub.f32 %v2432_v60, %v2443_v5  ;;  %v663_v61 = vsub.f32 %v2420_v45, %v2425_v53  ;;  %v664_v27 = vsub.f32 %v2430_v57, %v2440_v2  ;;  %v645_v36 = vld [vmem:[#allocation3] sm:$0xff]  ;;  %v646_v52 = vld [vmem:[#allocation3 + $0x8] sm:$0xff]  ;;  %v647_v23 = vld [vmem:[#allocation3 + $0x10] sm:$0xff] }
 0x2f2   : > { %s1839_s0 = smov 16   ;;  %v665_v31 = vsub.f32 %v2447_v12, %v2458_v16  ;;  %v666_v60 = vsub.f32 %v2445_v6, %v2455_v13  ;;  %v667_v57 = vsub.f32 %v2462_v20, %v2473_v28  ;;  %v668_v6 = vsub.f32 %v2460_v17, %v2470_v25  ;;  %v648_v35 = vld [vmem:[#allocation3 + $0x18] sm:$0xff]  ;;  %v2848_v3 = vld [vmem:[#allocation19_spill] sm:$0xff]  ;;  %v2850_v59 = vld [vmem:[#allocation20_spill] sm:$0xff] }
 0x2f3   : > { %1344 = dma.vmem_to_hbm [thread:$0]  (%p2847_p4), %s2588_s6, 4096, %s2586_s29, %s2592_s12, %s1837_s9, %s1838_s24, %s1839_s0   ;;  %v677_v26 = vmul.f32 1.442695, %v661_v33  ;;  %v679_v55 = vmul.f32 1.442695, %v662_v30  ;;  %v670_v20 = vsub.f32 %v2475_v29, %v2485_v37  ;;  %v669_v8 = vsub.f32 %v2848_v3, %v2488_v40  ;;  %v2849_v17 = vld [vmem:[#allocation22_spill] sm:$0xff] }
 0x2f4   : > { %v681_v1 = vmul.f32 1.442695, %v663_v61  ;;  %v683_v19 = vmul.f32 1.442695, %v664_v27  ;;  %v685_v58 = vmul.f32 1.442695, %v665_v31  ;;  %v672_v63 = vsub.f32 %v2850_v59, %v2849_v17 }
 0x2f5   : > { %1549 = vpow2.f32 %v677_v26  ;;  %v687_v34 = vmul.f32 1.442695, %v666_v60  ;;  %v689_v43 = vmul.f32 1.442695, %v667_v57  ;;  %v691_v14 = vmul.f32 1.442695, %v668_v6 }
 0x2f6   : > { %1551 = vpow2.f32 %v679_v55  ;;  %v649_v49 = vld [vmem:[#allocation3 + $0x20] sm:$0xff]  ;;  %v695_v22 = vmul.f32 1.442695, %v670_v20  ;;  %v693_v18 = vmul.f32 1.442695, %v669_v8  ;;  %v2852_v0 = vld [vmem:[#allocation21_spill] sm:$0xff] }
 0x2f7   : > { %1553 = vpow2.f32 %v681_v1  ;;  %v2851_v7 = vld [vmem:[#allocation23_spill] sm:$0xff]  ;;  %v699_v51 = vmul.f32 1.442695, %v672_v63  ;;  %v650_v26 = vld [vmem:[#allocation3 + $0x28] sm:$0xff]  ;;  %v2853_v30 = vld [vmem:[#allocation26_spill] sm:$0xff] }
 0x2f8   : > { %1555 = vpow2.f32 %v683_v19  ;;  %v671_v11 = vsub.f32 %v2852_v0, %v2851_v7  ;;  %v2854_v61 = vld [vmem:[#allocation24_spill] sm:$0xff]  ;;  %v2859_v6 = vld [vmem:[#allocation31_spill] sm:$0xff] }
 0x2f9   : > { %1557 = vpow2.f32 %v685_v58  ;;  %v674_v55 = vsub.f32 %v2854_v61, %v2853_v30  ;;  %v2858_v57 = vld [vmem:[#allocation28_spill] sm:$0xff]  ;;  %v655_v61 = vld [vmem:[#allocation3 + $0x50] sm:$0xff] }
 0x2fa   : > { %v697_v19 = vmul.f32 1.442695, %v671_v11 }
 0x2ff   : > { %v1550_v48 = vpop.eup %1549 }
 0x300   : > { %v709_v45 = vmul.f32 %v1550_v48, %v645_v36  ;;  %v1552_v4 = vpop.eup %1551  ;;  %v2855_v48 = vld [vmem:[#allocation27_spill] sm:$0xff]  ;;  %v2856_v36 = vld [vmem:[#allocation25_spill] sm:$0xff] }
 0x301   : > { %v710_v12 = vmul.f32 %v1552_v4, %v646_v52  ;;  %v1554_v24 = vpop.eup %1553  ;;  %v673_v60 = vsub.f32 %v2856_v36, %v2855_v48  ;;  %v651_v52 = vld [vmem:[#allocation3 + $0x30] sm:$0xff] }
 0x302   : > { %v711_v32 = vmul.f32 %v1554_v24, %v647_v23  ;;  %v1556_v21 = vpop.eup %1555 }
 0x303   : > { %v1558_v44 = vpop.eup %1557  ;;  %v712_v46 = vmul.f32 %v1556_v21, %v648_v35  ;;  %v701_v23 = vmul.f32 1.442695, %v673_v60  ;;  %v652_v35 = vld [vmem:[#allocation3 + $0x38] sm:$0xff] }
 0x304   : > { %v713_v41 = vmul.f32 %v1558_v44, %v649_v49 }
 0x345   : > { %v903_v62 = vpop.xlane.xlu1 %902 }
 0x346   : > { %v949_v38 = vadd.f32 %v903_v62, %v709_v45 }
 0x348   : > { %982 = vst.msk [vmem:[#allocation3] sm:$0xff] %vm965_vm1, %v949_v38  ;;  %1559 = vlog2.f32 %v949_v38 }
 0x349   : > { %v906_v9 = vpop.xlane.xlu0 %905  ;;  %1561 = vpow2.f32 %v687_v34  ;;  %v2857_v34 = vld [vmem:[#allocation30_spill] sm:$0xff] }
 0x34a   : > { %v950_v47 = vadd.f32 %v906_v9, %v710_v12  ;;  %v676_v38 = vsub.f32 %v2858_v57, %v2857_v34 }
 0x34c   : > { %983 = vst.msk [vmem:[#allocation3 + $0x8] sm:$0xff] %vm965_vm1, %v950_v47  ;;  %1563 = vlog2.f32 %v950_v47 }
 0x34d   : > { %v909_v10 = vpop.xlane.xlu0 %908  ;;  %1565 = vpow2.f32 %v689_v43  ;;  %v2860_v43 = vld [vmem:[#allocation29_spill] sm:$0xff] }
 0x34e   : > { %v951_v42 = vadd.f32 %v909_v10, %v711_v32  ;;  %v675_v47 = vsub.f32 %v2860_v43, %v2859_v6 }
 0x350   : > { %984 = vst.msk [vmem:[#allocation3 + $0x10] sm:$0xff] %vm965_vm1, %v951_v42  ;;  %1567 = vlog2.f32 %v951_v42  ;;  %v705_v42 = vmul.f32 1.442695, %v675_v47 }
 0x351   : > { %v912_v39 = vpop.xlane.xlu1 %911  ;;  %1569 = vpow2.f32 %v691_v14 }
 0x352   : > { %v1560_v29 = vpop.eup %1559  ;;  %v952_v15 = vadd.f32 %v912_v39, %v712_v46  ;;  %v653_v39 = vld [vmem:[#allocation3 + $0x40] sm:$0xff] }
 0x353   : > { %v1031_v50 = vmul.f32 0.6931472, %v1560_v29  ;;  %v1562_v54 = vpop.eup %1561 }
 0x354   : > { %985 = vst.msk [vmem:[#allocation3 + $0x18] sm:$0xff] %vm965_vm1, %v952_v15  ;;  %1571 = vlog2.f32 %v952_v15  ;;  %v714_v45 = vmul.f32 %v1562_v54, %v650_v26  ;;  %v656_v26 = vld [vmem:[#allocation3 + $0x58] sm:$0xff] }
 0x355   : > { %v915_v33 = vpop.xlane.xlu0 %914  ;;  %1573 = vpow2.f32 %v695_v22  ;;  %v1062_v1 = vadd.f32 %v1031_v50, %v2428_v56  ;;  %v703_v56 = vmul.f32 1.442695, %v674_v55  ;;  %v654_v22 = vld [vmem:[#allocation3 + $0x48] sm:$0xff] }
 0x356   : > { %v953_v27 = vadd.f32 %v915_v33, %v713_v41  ;;  %v1564_v31 = vpop.eup %1563  ;;  %1575 = vpow2.f32 %v693_v18 }
 0x357   : > { %1078 = vst.msk [vmem:[%s2134_s4] sm:$0xff] %vm965_vm1, %v1062_v1  ;;  %v1033_v58 = vmul.f32 0.6931472, %v1564_v31  ;;  %v1566_v4 = vpop.eup %1565 }
 0x358   : > { %986 = vst.msk [vmem:[#allocation3 + $0x20] sm:$0xff] %vm965_vm1, %v953_v27  ;;  %1577 = vlog2.f32 %v953_v27  ;;  %v715_v21 = vmul.f32 %v1566_v4, %v651_v52  ;;  %v658_v4 = vld [vmem:[#allocation3 + $0x68] sm:$0xff] }
 0x359   : > { %1579 = vpow2.f32 %v699_v51  ;;  %v918_v62 = vpop.xlane.xlu1 %917  ;;  %v1063_v12 = vadd.f32 %v1033_v58, %v2443_v5  ;;  %v707_v5 = vmul.f32 1.442695, %v676_v38 }
 0x35a   : > { %v954_v24 = vadd.f32 %v918_v62, %v714_v45  ;;  %v1568_v9 = vpop.eup %1567  ;;  %1581 = vpow2.f32 %v697_v19  ;;  %v657_v62 = vld [vmem:[#allocation3 + $0x60] sm:$0xff] }
 0x35b   : > { %1079 = vst.msk [vmem:[%s2134_s4 + $0x8] sm:$0xff] %vm965_vm1, %v1063_v12  ;;  %v1035_v32 = vmul.f32 0.6931472, %v1568_v9  ;;  %v1570_v20 = vpop.eup %1569 }
 0x35c   : > { %987 = vst.msk [vmem:[#allocation3 + $0x28] sm:$0xff] %vm965_vm1, %v954_v24  ;;  %1583 = vlog2.f32 %v954_v24  ;;  %v716_v63 = vmul.f32 %v1570_v20, %v652_v35 }
 0x35d   : > { %v921_v10 = vpop.xlane.xlu0 %920  ;;  %1585 = vpow2.f32 %v703_v56  ;;  %v1064_v14 = vadd.f32 %v1035_v32, %v2425_v53  ;;  %v660_v32 = vld [vmem:[#allocation3 + $0x78] sm:$0xff] }
 0x35e   : > { %v955_v3 = vadd.f32 %v921_v10, %v715_v21  ;;  %v1572_v8 = vpop.eup %1571  ;;  %1587 = vpow2.f32 %v701_v23  ;;  %v659_v21 = vld [vmem:[#allocation3 + $0x70] sm:$0xff] }
 0x35f   : > { %v1574_v44 = vpop.eup %1573  ;;  %1080 = vst.msk [vmem:[%s2134_s4 + $0x10] sm:$0xff] %vm965_vm1, %v1064_v14  ;;  %v1037_v59 = vmul.f32 0.6931472, %v1572_v8 }
 0x360   : > { %988 = vst.msk [vmem:[#allocation3 + $0x30] sm:$0xff] %vm965_vm1, %v955_v3  ;;  %1589 = vlog2.f32 %v955_v3  ;;  %v1576_v46 = vpop.eup %1575  ;;  %v718_v15 = vmul.f32 %v1574_v44, %v654_v22 }
 0x361   : > { %v924_v49 = vpop.xlane.xlu1 %923  ;;  %1591 = vpow2.f32 %v707_v5  ;;  %v1065_v53 = vadd.f32 %v1037_v59, %v2440_v2  ;;  %v717_v50 = vmul.f32 %v1576_v46, %v653_v39 }
 0x362   : > { %v1578_v29 = vpop.eup %1577  ;;  %v956_v18 = vadd.f32 %v924_v49, %v716_v63  ;;  %1593 = vpow2.f32 %v705_v42 }
 0x363   : > { %v1580_v0 = vpop.eup %1579  ;;  %v1039_v11 = vmul.f32 0.6931472, %v1578_v29  ;;  %1081 = vst.msk [vmem:[%s2134_s4 + $0x18] sm:$0xff] %vm965_vm1, %v1065_v53 }
 0x364   : > { %989 = vst.msk [vmem:[#allocation3 + $0x38] sm:$0xff] %vm965_vm1, %v956_v18  ;;  %1595 = vlog2.f32 %v956_v18  ;;  %v1582_v41 = vpop.eup %1581  ;;  %v720_v19 = vmul.f32 %v1580_v0, %v656_v26 }
 0x365   : > { %v1066_v54 = vadd.f32 %v1039_v11, %v2458_v16  ;;  %v930_v51 = vpop.xlane.xlu1 %929  ;;  %v927_v33 = vpop.xlane.xlu0 %926  ;;  %v719_v36 = vmul.f32 %v1582_v41, %v655_v61 }
 0x366   : > { %v1584_v2 = vpop.eup %1583  ;;  %v958_v55 = vadd.f32 %v930_v51, %v718_v15  ;;  %v957_v1 = vadd.f32 %v927_v33, %v717_v50 }
 0x367   : > { %1082 = vst.msk [vmem:[%s2134_s4 + $0x20] sm:$0xff] %vm965_vm1, %v1066_v54  ;;  %v1041_v27 = vmul.f32 0.6931472, %v1584_v2  ;;  %v1586_v31 = vpop.eup %1585 }
 0x368   : > { %991 = vst.msk [vmem:[#allocation3 + $0x48] sm:$0xff] %vm965_vm1, %v958_v55  ;;  %1597 = vlog2.f32 %v958_v55  ;;  %990 = vst.msk [vmem:[#allocation3 + $0x40] sm:$0xff] %vm965_vm1, %v957_v1  ;;  %v1588_v16 = vpop.eup %1587  ;;  %v722_v24 = vmul.f32 %v1586_v31, %v658_v4 }
 0x369   : > { %v1067_v60 = vadd.f32 %v1041_v27, %v2455_v13  ;;  %1599 = vlog2.f32 %v957_v1  ;;  %v936_v58 = vpop.xlane.xlu1 %935  ;;  %v933_v45 = vpop.xlane.xlu0 %932  ;;  %v721_v13 = vmul.f32 %v1588_v16, %v657_v62 }
 0x36a   : > { %v1590_v52 = vpop.eup %1589  ;;  %v960_v56 = vadd.f32 %v936_v58, %v720_v19  ;;  %v959_v57 = vadd.f32 %v933_v45, %v719_v36 }
 0x36b   : > { %1083 = vst.msk [vmem:[%s2134_s4 + $0x28] sm:$0xff] %vm965_vm1, %v1067_v60  ;;  %v1043_v38 = vmul.f32 0.6931472, %v1590_v52  ;;  %v1592_v12 = vpop.eup %1591 }
 0x36c   : > { %993 = vst.msk [vmem:[#allocation3 + $0x58] sm:$0xff] %vm965_vm1, %v960_v56  ;;  %1601 = vlog2.f32 %v960_v56  ;;  %992 = vst.msk [vmem:[#allocation3 + $0x50] sm:$0xff] %vm965_vm1, %v959_v57  ;;  %v1594_v9 = vpop.eup %1593  ;;  %v724_v14 = vmul.f32 %v1592_v12, %v660_v32 }
 0x36d   : > { %v1068_v23 = vadd.f32 %v1043_v38, %v2473_v28  ;;  %1603 = vlog2.f32 %v959_v57  ;;  %v942_v43 = vpop.xlane.xlu1 %941  ;;  %v939_v47 = vpop.xlane.xlu0 %938  ;;  %v723_v3 = vmul.f32 %v1594_v9, %v659_v21 }
 0x36e   : > { %v1596_v20 = vpop.eup %1595  ;;  %v962_v10 = vadd.f32 %v942_v43, %v722_v24  ;;  %v961_v35 = vadd.f32 %v939_v47, %v721_v13 }
 0x36f   : > { %1084 = vst.msk [vmem:[%s2134_s4 + $0x30] sm:$0xff] %vm965_vm1, %v1068_v23  ;;  %v1045_v5 = vmul.f32 0.6931472, %v1596_v20 }
 0x370   : > { %995 = vst.msk [vmem:[#allocation3 + $0x68] sm:$0xff] %vm965_vm1, %v962_v10  ;;  %1605 = vlog2.f32 %v962_v10  ;;  %994 = vst.msk [vmem:[#allocation3 + $0x60] sm:$0xff] %vm965_vm1, %v961_v35 }
 0x371   : > { %v1069_v28 = vadd.f32 %v1045_v5, %v2470_v25  ;;  %1607 = vlog2.f32 %v961_v35  ;;  %v948_v8 = vpop.xlane.xlu1 %947  ;;  %v945_v42 = vpop.xlane.xlu0 %944 }
 0x372   : > { %v1598_v44 = vpop.eup %1597  ;;  %v964_v59 = vadd.f32 %v948_v8, %v724_v14  ;;  %v963_v63 = vadd.f32 %v945_v42, %v723_v3 }
 0x373   : > { %v1600_v46 = vpop.eup %1599  ;;  %1085 = vst.msk [vmem:[%s2134_s4 + $0x38] sm:$0xff] %vm965_vm1, %v1069_v28  ;;  %v1049_v49 = vmul.f32 0.6931472, %v1598_v44 }
 0x374   : > { %v1047_v22 = vmul.f32 0.6931472, %v1600_v46  ;;  %997 = vst.msk [vmem:[#allocation3 + $0x78] sm:$0xff] %vm965_vm1, %v964_v59  ;;  %1609 = vlog2.f32 %v964_v59  ;;  %996 = vst.msk [vmem:[#allocation3 + $0x70] sm:$0xff] %vm965_vm1, %v963_v63 }
 0x375   : > { %v1071_v25 = vadd.f32 %v1049_v49, %v2485_v37  ;;  %1611 = vlog2.f32 %v963_v63 }
 0x376   : > { %v1602_v39 = vpop.eup %1601  ;;  %v1070_v29 = vadd.f32 %v1047_v22, %v2488_v40 }
 0x377   : > { %v1604_v53 = vpop.eup %1603  ;;  %1087 = vst.msk [vmem:[%s2134_s4 + $0x48] sm:$0xff] %vm965_vm1, %v1071_v25  ;;  %v1053_v18 = vmul.f32 0.6931472, %v1602_v39 }
 0x378   : > { %1086 = vst.msk [vmem:[%s2134_s4 + $0x40] sm:$0xff] %vm965_vm1, %v1070_v29  ;;  %v1051_v0 = vmul.f32 0.6931472, %v1604_v53 }
 0x379   : > { %v1073_v11 = vadd.f32 %v1053_v18, %v2849_v17 }
 0x37a   : > { %v1606_v15 = vpop.eup %1605  ;;  %v1072_v50 = vadd.f32 %v1051_v0, %v2851_v7 }
 0x37b   : > { %v1608_v37 = vpop.eup %1607  ;;  %1089 = vst.msk [vmem:[%s2134_s4 + $0x58] sm:$0xff] %vm965_vm1, %v1073_v11  ;;  %v1057_v40 = vmul.f32 0.6931472, %v1606_v15 }
 0x37c   : > { %1088 = vst.msk [vmem:[%s2134_s4 + $0x50] sm:$0xff] %vm965_vm1, %v1072_v50  ;;  %v1055_v41 = vmul.f32 0.6931472, %v1608_v37 }
 0x37d   : > { %v1075_v54 = vadd.f32 %v1057_v40, %v2853_v30 }
 0x37e   : > { %v1610_v51 = vpop.eup %1609  ;;  %v1074_v33 = vadd.f32 %v1055_v41, %v2855_v48 }
 0x37f   : > { %v1612_v26 = vpop.eup %1611  ;;  %1091 = vst.msk [vmem:[%s2134_s4 + $0x68] sm:$0xff] %vm965_vm1, %v1075_v54  ;;  %v1061_v17 = vmul.f32 0.6931472, %v1610_v51 }
 0x380   : > { %1090 = vst.msk [vmem:[%s2134_s4 + $0x60] sm:$0xff] %vm965_vm1, %v1074_v33  ;;  %v1059_v7 = vmul.f32 0.6931472, %v1612_v26 }
 0x381   : > { %v1077_v61 = vadd.f32 %v1061_v17, %v2857_v34 }
 0x382   : > { %v1076_v2 = vadd.f32 %v1059_v7, %v2859_v6 }
 0x383   : > { %1093 = vst.msk [vmem:[%s2134_s4 + $0x78] sm:$0xff] %vm965_vm1, %v1077_v61 }
 0x384   : > { %1092 = vst.msk [vmem:[%s2134_s4 + $0x70] sm:$0xff] %vm965_vm1, %v1076_v2 }
 0x385 PF: > { %p1358_p4 = scmp.ge.s32.totalorder %s1823_s28, 2  ;;  %s1135_s14 = sand.u32 1, %s1771_s15  }
 0x386   : > { %p2861_p11 = scmp.ne.s32.totalorder %s2823_s7, 0  ;;  %s1136_s6 = scalar_lea.sflag [#allocation6], %s1135_s14 }
 0x388   : > { %p1354_p2 = pnand %p1358_p4, %p2861_p11 }
 0x38a   : > { %1766 = dma.done.wait (!%p1354_p2), %s1136_s6, 4096  }
 0x38b   : > { %1768 = vsyncadd (!%p1354_p2), %s1136_s6, 4294963200  ;;  %s24_s28 = sadd.s32 1, %s1823_s28   ;;  %s2863_s4 = sld [smem:[#allocation17_spill]] }
 0x38c   : > { %p2717_p5 = scmp.ge.s32.totalorder %s24_s28, 6   ;;  %s2864_s25 = sld [smem:[#allocation14_spill]] }
 0x38d   : > { %s2865_s7 = sld [smem:[#allocation15_spill]]  ;;  %s2866_s27 = sld [smem:[#allocation16_spill]] }
 0x38e   : > { %s2867_s15 = smov %s1775_s16  ;;  %s2868_s16 = smov %s1779_s17 }
 0x38f   : > { %s2869_s17 = smov %s2056_s2  ;;  %s2870_s18 = smov %s1787_s19 }
 0x390   : > { %s2871_s19 = smov %s1791_s20  ;;  %s2873_s21 = smov %s1799_s22 }
 0x391   : > { %s2872_s20 = smov %s2863_s4  ;;  %s2874_s22 = smov %s1803_s23 }
 0x392   : > { %s2875_s23 = smov %s2053_s10  ;;  %s2876_s24 = smov %s1815_s26 }
 0x393   : > { %s2877_s26 = smov %s2865_s7  ;;  %23 = sbr.rel (!%p2717_p5) target bundleno = 17 (0x11), region = 109 }
 0x39a   :  { %1149 = vsyncpa [#allocation5], 1 }
 0x39b   :  { %1151 = vsyncpa [#allocation5 + $0x1], 1 }
 0x39c   :  { %1152 = vsyncpa [#allocation8], 1 }
 0x39d   :  { %1154 = vsyncpa [#allocation8 + $0x1], 1 }
 0x39e   :  { %1155 = vsyncpa [#allocation6], 1 }
 0x39f   :  { %1157 = vsyncpa [#allocation6 + $0x1], 1 }

</bundles_post_ra>
